<compile_context>
chip_gen: v7x
topology: tpu7x:2x2x1
jax: 0.10.0
libtpu: 0.0.40
codegen_flags: <defaults>
</compile_context>

<pallas_src>
import functools
import math

import jax
import jax.numpy as jnp
from jax.experimental import pallas as pl
from jax.experimental.pallas import tpu as pltpu


def _round_up(x, m):
    return ((x + m - 1) // m) * m


# ---------------------------------------------------------------------------
# Pallas kernel: one tile of TB samples per grid step.
# ---------------------------------------------------------------------------
def _attention_kernel(ego_ref, oppo_ref, wq_ref, bq_ref, wk_ref, bk_ref,
                      wv_ref, bv_ref, hsel_ref, hbc_ref, wo_ref, bo_ref,
                      out_ref, *, tb, n_ctx):
    ego = ego_ref[...]            # (TB, ego_dim)
    opp = oppo_ref[...]           # (TB*N, oppo_dim)  (batch-major, context-minor rows)

    # Projections. The 1/sqrt(head_dim) scale is already folded into wq/bq.
    q = jnp.dot(ego, wq_ref[...], preferred_element_type=jnp.float32) + bq_ref[...]   # (TB, E)
    k = jnp.dot(opp, wk_ref[...], preferred_element_type=jnp.float32) + bk_ref[...]   # (TB*N, E)
    v = jnp.dot(opp, wv_ref[...], preferred_element_type=jnp.float32) + bv_ref[...]   # (TB*N, E)

    e_dim = q.shape[-1]

    # Repeat each sample's query across its N context rows (row-major match).
    qx = jnp.broadcast_to(q[:, None, :], (tb, n_ctx, e_dim)).reshape(tb * n_ctx, e_dim)

    # All-heads logits: elementwise q*k, then per-head lane reduction through
    # the constant (E, 128) head-indicator matrix (columns >= num_heads are 0).
    logits = jnp.dot(qx * k, hsel_ref[...],
                     preferred_element_type=jnp.float32)          # (TB*N, 128)

    h_pad = logits.shape[-1]
    l3 = logits.reshape(tb, n_ctx, h_pad)                          # (TB, N, 128)
    m = jnp.max(l3, axis=1, keepdims=True)                         # softmax over N
    p = jnp.exp(l3 - m)
    denom = jnp.sum(p, axis=1, keepdims=True)
    attn = p * pl.reciprocal(denom, approx=True)                   # (TB, N, 128)

    # Broadcast each head's attention weight across its head_dim lanes,
    # apply to v, and reduce over the N context rows.
    attn_full = jnp.dot(attn.reshape(tb * n_ctx, h_pad), hbc_ref[...],
                        preferred_element_type=jnp.float32)        # (TB*N, E)
    values = jnp.sum((attn_full * v).reshape(tb, n_ctx, e_dim), axis=1)   # (TB, E)

    # Output projection into a lane-dense, 128-wide padded slab.
    o = jnp.dot(values, wo_ref[...], preferred_element_type=jnp.float32) + bo_ref[...]
    out_ref[...] = o.astype(out_ref.dtype)


# ---------------------------------------------------------------------------
# Wrapper
# ---------------------------------------------------------------------------
def attention_forward(ego, oppo, params, *, embed_dim=96, num_heads=3, block_b=256):
    """ego: (B, ego_dim), oppo: (B, N, oppo_dim) -> (B, embed_dim)."""
    assert embed_dim % num_heads == 0
    head_dim = embed_dim // num_heads

    B, ego_dim = ego.shape
    _, N, oppo_dim = oppo.shape

    H_PAD = 128                                  # pad head axis to a full lane width
    OUT_PAD = _round_up(embed_dim, 128)          # lane-dense output slab width

    # Fold the attention scale into the q projection.
    scale = 1.0 / math.sqrt(head_dim)
    wq = params["wq"].astype(jnp.float32) * scale
    bq = params["bq"].astype(jnp.float32) * scale

    # Split interleaved kv projection into head-major k / v projections.
    wkv = params["wkv"].astype(jnp.float32).reshape(oppo_dim, num_heads, 2, head_dim)
    bkv = params["bkv"].astype(jnp.float32).reshape(1, num_heads, 2, head_dim)
    wk = wkv[:, :, 0, :].reshape(oppo_dim, embed_dim)
    wv = wkv[:, :, 1, :].reshape(oppo_dim, embed_dim)
    bk = bkv[:, :, 0, :].reshape(1, embed_dim)
    bv = bkv[:, :, 1, :].reshape(1, embed_dim)

    # Zero-pad output projection to a 128-wide lane-dense slab.
    wo = jnp.zeros((embed_dim, OUT_PAD), jnp.float32).at[:, :embed_dim].set(
        params["wo"].astype(jnp.float32))
    bo = jnp.zeros((1, OUT_PAD), jnp.float32).at[:, :embed_dim].set(
        params["bo"].astype(jnp.float32))

    # Constant head-indicator matrices: (E, 128) selector and its transpose.
    head_id = jnp.arange(embed_dim) // head_dim
    head_sel = (head_id[:, None] == jnp.arange(H_PAD)[None, :]).astype(jnp.float32)
    head_bcast = head_sel.T                                        # (128, E)

    # Batch tiling (TB multiple of 8; pad B up to a multiple of TB with zeros).
    TB = min(block_b, _round_up(B, 8))
    B_pad = _round_up(B, TB)
    ego_p = jnp.pad(ego.astype(jnp.float32), ((0, B_pad - B), (0, 0)))
    oppo_p = jnp.pad(oppo.astype(jnp.float32), ((0, B_pad - B), (0, 0), (0, 0)))
    oppo_flat = oppo_p.reshape(B_pad * N, oppo_dim)                # row-major (b, n) flatten

    kernel = functools.partial(_attention_kernel, tb=TB, n_ctx=N)
    rep = lambda b: (0, 0)                                         # replicated weight blocks

    out = pl.pallas_call(
        kernel,
        out_shape=jax.ShapeDtypeStruct((B_pad, OUT_PAD), jnp.float32),
        grid_spec=pltpu.PrefetchScalarGridSpec(
            num_scalar_prefetch=0,
            grid=(B_pad // TB,),
            in_specs=[
                pl.BlockSpec((TB, ego_dim), lambda b: (b, 0)),
                pl.BlockSpec((TB * N, oppo_dim), lambda b: (b, 0)),
                pl.BlockSpec((ego_dim, embed_dim), rep),
                pl.BlockSpec((1, embed_dim), rep),
                pl.BlockSpec((oppo_dim, embed_dim), rep),
                pl.BlockSpec((1, embed_dim), rep),
                pl.BlockSpec((oppo_dim, embed_dim), rep),
                pl.BlockSpec((1, embed_dim), rep),
                pl.BlockSpec((embed_dim, H_PAD), rep),
                pl.BlockSpec((H_PAD, embed_dim), rep),
                pl.BlockSpec((embed_dim, OUT_PAD), rep),
                pl.BlockSpec((1, OUT_PAD), rep),
            ],
            out_specs=pl.BlockSpec((TB, OUT_PAD), lambda b: (b, 0)),
        ),
        compiler_params=pltpu.CompilerParams(
            dimension_semantics=("parallel",)),
    )(ego_p, oppo_flat, wq, bq, wk, bk, wv, bv, head_sel, head_bcast, wo, bo)

    return out[:B, :embed_dim]


# ---------------------------------------------------------------------------
# Deterministic parameter init (xavier_uniform weights, zero bias),
# matching the PyTorch module's _reset_parameters. Weights stored (in, out).
# ---------------------------------------------------------------------------
def init_params(key, ego_dim, oppo_dim, embed_dim=96):
    def xavier(key, fan_in, fan_out):
        bound = math.sqrt(6.0 / (fan_in + fan_out))
        return jax.random.uniform(key, (fan_in, fan_out), jnp.float32,
                                  minval=-bound, maxval=bound)

    k1, k2, k3 = jax.random.split(key, 3)
    return {
        "wq": xavier(k1, ego_dim, embed_dim),
        "bq": jnp.zeros((1, embed_dim), jnp.float32),
        "wkv": xavier(k2, oppo_dim, 2 * embed_dim),
        "bkv": jnp.zeros((1, 2 * embed_dim), jnp.float32),
        "wo": xavier(k3, embed_dim, embed_dim),
        "bo": jnp.zeros((1, embed_dim), jnp.float32),
    }


# ---------------------------------------------------------------------------
# Plain-JAX reference (mirrors the PyTorch forward exactly).
# ---------------------------------------------------------------------------
def attention_reference(ego, oppo, params, *, embed_dim=96, num_heads=3):
    head_dim = embed_dim // num_heads
    B, _ = ego.shape
    _, N, _ = oppo.shape
    q = (ego @ params["wq"] + params["bq"]).reshape(B, num_heads, 1, head_dim)
    kv = (oppo @ params["wkv"] + params["bkv"]).reshape(B, N, num_heads, 2 * head_dim)
    kv = jnp.transpose(kv, (0, 2, 1, 3))
    k, v = kv[..., :head_dim], kv[..., head_dim:]
    logits = jnp.einsum("bhqd,bhkd->bhqk", q, k) / math.sqrt(head_dim)
    attn = jax.nn.softmax(logits, axis=-1)
    values = jnp.einsum("bhqk,bhkd->bhqd", attn, v).reshape(B, embed_dim)
    return values @ params["wo"] + params["bo"]


if __name__ == "__main__":
    embed_dim, num_heads = 96, 3
    ego_dim, oppo_dim, N = 8, 8, 5

    key = jax.random.PRNGKey(0)
    kp, ke, ko, ke2, ko2 = jax.random.split(key, 5)
    params = init_params(kp, ego_dim, oppo_dim, embed_dim)

    # Small case matching the module defaults.
    B = 2
    ego = jax.random.normal(ke, (B, ego_dim), jnp.float32)
    oppo = jax.random.normal(ko, (B, N, oppo_dim), jnp.float32)
    out = jax.block_until_ready(attention_forward(
        ego, oppo, params, embed_dim=embed_dim, num_heads=num_heads))
    ref = attention_reference(ego, oppo, params,
                              embed_dim=embed_dim, num_heads=num_heads)
    assert out.shape == (B, embed_dim)
    assert jnp.allclose(out, ref, atol=5e-3, rtol=5e-3), "mismatch (small batch)"

    # Larger batch exercising the multi-step batched grid + padding path.
    B2 = 300
    ego2 = jax.random.normal(ke2, (B2, ego_dim), jnp.float32)
    oppo2 = jax.random.normal(ko2, (B2, N, oppo_dim), jnp.float32)
    out2 = jax.block_until_ready(attention_forward(
        ego2, oppo2, params, embed_dim=embed_dim, num_heads=num_heads, block_b=128))
    ref2 = attention_reference(ego2, oppo2, params,
                               embed_dim=embed_dim, num_heads=num_heads)
    assert out2.shape == (B2, embed_dim)
    assert jnp.allclose(out2, ref2, atol=5e-3, rtol=5e-3), "mismatch (batched)"

    print("KERNEL_OK")
</pallas_src>

<mosaic_0001>
module attributes {stable_mosaic.version = 11 : i64} {
  func.func @_attention_kernel(%arg0: i32, %arg1: memref<8x8xf32, #tpu.memory_space<vmem>>, %arg2: memref<40x8xf32, #tpu.memory_space<vmem>>, %arg3: memref<8x96xf32, #tpu.memory_space<vmem>>, %arg4: memref<1x96xf32, #tpu.memory_space<vmem>>, %arg5: memref<8x96xf32, #tpu.memory_space<vmem>>, %arg6: memref<1x96xf32, #tpu.memory_space<vmem>>, %arg7: memref<8x96xf32, #tpu.memory_space<vmem>>, %arg8: memref<1x96xf32, #tpu.memory_space<vmem>>, %arg9: memref<96x128xf32, #tpu.memory_space<vmem>>, %arg10: memref<128x96xf32, #tpu.memory_space<vmem>>, %arg11: memref<96x128xf32, #tpu.memory_space<vmem>>, %arg12: memref<1x128xf32, #tpu.memory_space<vmem>>, %arg13: memref<8x128xf32, #tpu.memory_space<vmem>>) attributes {dimension_semantics = [#tpu.dimension_semantics<parallel>], iteration_bounds = array<i64: 1>, scalar_prefetch = 0 : i64, scratch_operands = 0 : i64, tpu.core_type = #tpu.core_type<tc>, window_params = [{transform_indices = @transform_0, window_bounds = array<i64: 8, 8>}, {transform_indices = @transform_1, window_bounds = array<i64: 40, 8>}, {pipeline_mode = #tpu.pipeline_mode<synchronous>, transform_indices = @transform_2, window_bounds = array<i64: 8, 96>}, {pipeline_mode = #tpu.pipeline_mode<synchronous>, transform_indices = @transform_3, window_bounds = array<i64: 1, 96>}, {pipeline_mode = #tpu.pipeline_mode<synchronous>, transform_indices = @transform_4, window_bounds = array<i64: 8, 96>}, {pipeline_mode = #tpu.pipeline_mode<synchronous>, transform_indices = @transform_5, window_bounds = array<i64: 1, 96>}, {pipeline_mode = #tpu.pipeline_mode<synchronous>, transform_indices = @transform_6, window_bounds = array<i64: 8, 96>}, {pipeline_mode = #tpu.pipeline_mode<synchronous>, transform_indices = @transform_7, window_bounds = array<i64: 1, 96>}, {pipeline_mode = #tpu.pipeline_mode<synchronous>, transform_indices = @transform_8, window_bounds = array<i64: 96, 128>}, {pipeline_mode = #tpu.pipeline_mode<synchronous>, transform_indices = @transform_9, window_bounds = array<i64: 128, 96>}, {pipeline_mode = #tpu.pipeline_mode<synchronous>, transform_indices = @transform_10, window_bounds = array<i64: 96, 128>}, {pipeline_mode = #tpu.pipeline_mode<synchronous>, transform_indices = @transform_11, window_bounds = array<i64: 1, 128>}, {transform_indices = @transform_12, window_bounds = array<i64: 8, 128>}]} {
    %c0 = arith.constant 0 : index
    %c0_0 = arith.constant 0 : index
    %0 = vector.load %arg1[%c0, %c0_0] : memref<8x8xf32, #tpu.memory_space<vmem>>, vector<8x8xf32>
    %c0_1 = arith.constant 0 : index
    %c0_2 = arith.constant 0 : index
    %1 = vector.load %arg2[%c0_1, %c0_2] : memref<40x8xf32, #tpu.memory_space<vmem>>, vector<40x8xf32>
    %c0_3 = arith.constant 0 : index
    %c0_4 = arith.constant 0 : index
    %2 = vector.load %arg3[%c0_3, %c0_4] : memref<8x96xf32, #tpu.memory_space<vmem>>, vector<8x96xf32>
    %cst = arith.constant dense<0.000000e+00> : vector<8x96xf32>
    %3 = tpu.matmul %0, %2, %cst {dimension_numbers = #tpu.dot_dimension_numbers<[1], [0], [0], [1], [0, 0, 1, 1], [], []>} : vector<8x8xf32>, vector<8x96xf32>, vector<8x96xf32> -> vector<8x96xf32>
    %c0_5 = arith.constant 0 : index
    %c0_6 = arith.constant 0 : index
    %4 = vector.load %arg4[%c0_5, %c0_6] : memref<1x96xf32, #tpu.memory_space<vmem>>, vector<1x96xf32>
    %5 = vector.broadcast %4 : vector<1x96xf32> to vector<8x96xf32>
    %6 = arith.addf %3, %5 : vector<8x96xf32>
    %c0_7 = arith.constant 0 : index
    %c0_8 = arith.constant 0 : index
    %7 = vector.load %arg5[%c0_7, %c0_8] : memref<8x96xf32, #tpu.memory_space<vmem>>, vector<8x96xf32>
    %cst_9 = arith.constant dense<0.000000e+00> : vector<40x96xf32>
    %8 = tpu.matmul %1, %7, %cst_9 {dimension_numbers = #tpu.dot_dimension_numbers<[1], [0], [0], [1], [0, 0, 1, 1], [], []>} : vector<40x8xf32>, vector<8x96xf32>, vector<40x96xf32> -> vector<40x96xf32>
    %c0_10 = arith.constant 0 : index
    %c0_11 = arith.constant 0 : index
    %9 = vector.load %arg6[%c0_10, %c0_11] : memref<1x96xf32, #tpu.memory_space<vmem>>, vector<1x96xf32>
    %10 = vector.broadcast %9 : vector<1x96xf32> to vector<40x96xf32>
    %11 = arith.addf %8, %10 : vector<40x96xf32>
    %c0_12 = arith.constant 0 : index
    %c0_13 = arith.constant 0 : index
    %12 = vector.load %arg7[%c0_12, %c0_13] : memref<8x96xf32, #tpu.memory_space<vmem>>, vector<8x96xf32>
    %cst_14 = arith.constant dense<0.000000e+00> : vector<40x96xf32>
    %13 = tpu.matmul %1, %12, %cst_14 {dimension_numbers = #tpu.dot_dimension_numbers<[1], [0], [0], [1], [0, 0, 1, 1], [], []>} : vector<40x8xf32>, vector<8x96xf32>, vector<40x96xf32> -> vector<40x96xf32>
    %c0_15 = arith.constant 0 : index
    %c0_16 = arith.constant 0 : index
    %14 = vector.load %arg8[%c0_15, %c0_16] : memref<1x96xf32, #tpu.memory_space<vmem>>, vector<1x96xf32>
    %15 = vector.broadcast %14 : vector<1x96xf32> to vector<40x96xf32>
    %16 = arith.addf %13, %15 : vector<40x96xf32>
    %17 = vector.shape_cast %6 : vector<8x96xf32> to vector<8x1x96xf32>
    %18 = vector.shape_cast %17 : vector<8x1x96xf32> to vector<8x1x96xf32>
    %19 = vector.broadcast %18 : vector<8x1x96xf32> to vector<8x5x96xf32>
    %20 = vector.shape_cast %19 : vector<8x5x96xf32> to vector<40x96xf32>
    %21 = arith.mulf %20, %11 : vector<40x96xf32>
    %c0_17 = arith.constant 0 : index
    %c0_18 = arith.constant 0 : index
    %22 = vector.load %arg9[%c0_17, %c0_18] : memref<96x128xf32, #tpu.memory_space<vmem>>, vector<96x128xf32>
    %cst_19 = arith.constant dense<0.000000e+00> : vector<40x128xf32>
    %23 = tpu.matmul %21, %22, %cst_19 {dimension_numbers = #tpu.dot_dimension_numbers<[1], [0], [0], [1], [0, 0, 1, 1], [], []>} : vector<40x96xf32>, vector<96x128xf32>, vector<40x128xf32> -> vector<40x128xf32>
    %24 = vector.shape_cast %23 : vector<40x128xf32> to vector<8x5x128xf32>
    %cst_20 = arith.constant dense<0xFF800000> : vector<8x128xf32>
    %25 = vector.multi_reduction <maximumf>, %24, %cst_20 [1] : vector<8x5x128xf32> to vector<8x128xf32>
    %26 = vector.shape_cast %25 : vector<8x128xf32> to vector<8x1x128xf32>
    %27 = vector.broadcast %26 : vector<8x1x128xf32> to vector<8x5x128xf32>
    %28 = arith.subf %24, %27 : vector<8x5x128xf32>
    %29 = math.exp %28 : vector<8x5x128xf32>
    %cst_21 = arith.constant dense<0.000000e+00> : vector<8x128xf32>
    %30 = vector.multi_reduction <add>, %29, %cst_21 [1] : vector<8x5x128xf32> to vector<8x128xf32>
    %31 = vector.shape_cast %30 : vector<8x128xf32> to vector<8x1x128xf32>
    %32 = tpu.reciprocal %31 {approx = true} : vector<8x1x128xf32> -> vector<8x1x128xf32>
    %33 = vector.broadcast %32 : vector<8x1x128xf32> to vector<8x5x128xf32>
    %34 = arith.mulf %29, %33 : vector<8x5x128xf32>
    %35 = vector.shape_cast %34 : vector<8x5x128xf32> to vector<40x128xf32>
    %c0_22 = arith.constant 0 : index
    %c0_23 = arith.constant 0 : index
    %36 = vector.load %arg10[%c0_22, %c0_23] : memref<128x96xf32, #tpu.memory_space<vmem>>, vector<128x96xf32>
    %cst_24 = arith.constant dense<0.000000e+00> : vector<40x96xf32>
    %37 = tpu.matmul %35, %36, %cst_24 {dimension_numbers = #tpu.dot_dimension_numbers<[1], [0], [0], [1], [0, 0, 1, 1], [], []>} : vector<40x128xf32>, vector<128x96xf32>, vector<40x96xf32> -> vector<40x96xf32>
    %38 = arith.mulf %37, %16 : vector<40x96xf32>
    %39 = vector.shape_cast %38 : vector<40x96xf32> to vector<8x5x96xf32>
    %cst_25 = arith.constant dense<0.000000e+00> : vector<8x96xf32>
    %40 = vector.multi_reduction <add>, %39, %cst_25 [1] : vector<8x5x96xf32> to vector<8x96xf32>
    %c0_26 = arith.constant 0 : index
    %c0_27 = arith.constant 0 : index
    %41 = vector.load %arg11[%c0_26, %c0_27] : memref<96x128xf32, #tpu.memory_space<vmem>>, vector<96x128xf32>
    %cst_28 = arith.constant dense<0.000000e+00> : vector<8x128xf32>
    %42 = tpu.matmul %40, %41, %cst_28 {dimension_numbers = #tpu.dot_dimension_numbers<[1], [0], [0], [1], [0, 0, 1, 1], [], []>} : vector<8x96xf32>, vector<96x128xf32>, vector<8x128xf32> -> vector<8x128xf32>
    %c0_29 = arith.constant 0 : index
    %c0_30 = arith.constant 0 : index
    %43 = vector.load %arg12[%c0_29, %c0_30] : memref<1x128xf32, #tpu.memory_space<vmem>>, vector<1x128xf32>
    %44 = vector.broadcast %43 : vector<1x128xf32> to vector<8x128xf32>
    %45 = arith.addf %42, %44 : vector<8x128xf32>
    %c0_31 = arith.constant 0 : index
    %c0_32 = arith.constant 0 : index
    %46 = vector.load %arg13[%c0_31, %c0_32] : memref<8x128xf32, #tpu.memory_space<vmem>>, vector<8x128xf32>
    tpu.vector_store %arg13[%c0_31, %c0_32], %45 {strides = array<i32>} : memref<8x128xf32, #tpu.memory_space<vmem>>, vector<8x128xf32>,
    return
  }
  func.func @transform_0(%arg0: i32) -> (i32, i32) {
    %c0_i32 = arith.constant 0 : i32
    %c0_i32_0 = arith.constant 0 : i32
    return %arg0, %c0_i32 : i32, i32
  }
  func.func @transform_1(%arg0: i32) -> (i32, i32) {
    %c0_i32 = arith.constant 0 : i32
    %c0_i32_0 = arith.constant 0 : i32
    return %arg0, %c0_i32 : i32, i32
  }
  func.func @transform_2(%arg0: i32) -> (i32, i32) {
    %c0_i32 = arith.constant 0 : i32
    %c0_i32_0 = arith.constant 0 : i32
    %c0_i32_1 = arith.constant 0 : i32
    return %c0_i32, %c0_i32_0 : i32, i32
  }
  func.func @transform_3(%arg0: i32) -> (i32, i32) {
    %c0_i32 = arith.constant 0 : i32
    %c0_i32_0 = arith.constant 0 : i32
    %c0_i32_1 = arith.constant 0 : i32
    return %c0_i32, %c0_i32_0 : i32, i32
  }
  func.func @transform_4(%arg0: i32) -> (i32, i32) {
    %c0_i32 = arith.constant 0 : i32
    %c0_i32_0 = arith.constant 0 : i32
    %c0_i32_1 = arith.constant 0 : i32
    return %c0_i32, %c0_i32_0 : i32, i32
  }
  func.func @transform_5(%arg0: i32) -> (i32, i32) {
    %c0_i32 = arith.constant 0 : i32
    %c0_i32_0 = arith.constant 0 : i32
    %c0_i32_1 = arith.constant 0 : i32
    return %c0_i32, %c0_i32_0 : i32, i32
  }
  func.func @transform_6(%arg0: i32) -> (i32, i32) {
    %c0_i32 = arith.constant 0 : i32
    %c0_i32_0 = arith.constant 0 : i32
    %c0_i32_1 = arith.constant 0 : i32
    return %c0_i32, %c0_i32_0 : i32, i32
  }
  func.func @transform_7(%arg0: i32) -> (i32, i32) {
    %c0_i32 = arith.constant 0 : i32
    %c0_i32_0 = arith.constant 0 : i32
    %c0_i32_1 = arith.constant 0 : i32
    return %c0_i32, %c0_i32_0 : i32, i32
  }
  func.func @transform_8(%arg0: i32) -> (i32, i32) {
    %c0_i32 = arith.constant 0 : i32
    %c0_i32_0 = arith.constant 0 : i32
    %c0_i32_1 = arith.constant 0 : i32
    return %c0_i32, %c0_i32_0 : i32, i32
  }
  func.func @transform_9(%arg0: i32) -> (i32, i32) {
    %c0_i32 = arith.constant 0 : i32
    %c0_i32_0 = arith.constant 0 : i32
    %c0_i32_1 = arith.constant 0 : i32
    return %c0_i32, %c0_i32_0 : i32, i32
  }
  func.func @transform_10(%arg0: i32) -> (i32, i32) {
    %c0_i32 = arith.constant 0 : i32
    %c0_i32_0 = arith.constant 0 : i32
    %c0_i32_1 = arith.constant 0 : i32
    return %c0_i32, %c0_i32_0 : i32, i32
  }
  func.func @transform_11(%arg0: i32) -> (i32, i32) {
    %c0_i32 = arith.constant 0 : i32
    %c0_i32_0 = arith.constant 0 : i32
    %c0_i32_1 = arith.constant 0 : i32
    return %c0_i32, %c0_i32_0 : i32, i32
  }
  func.func @transform_12(%arg0: i32) -> (i32, i32) {
    %c0_i32 = arith.constant 0 : i32
    %c0_i32_0 = arith.constant 0 : i32
    return %arg0, %c0_i32 : i32, i32
  }
}

</mosaic_0001>

<bundles_post_ra>
// kernel: tpu_custom_call.1
= control target key start
LH: loop header
LB: loop body
LE: loop exit
PB: predicated region body
PF: predicated region fallthrough
CT: control target
= control target key end

     0   :  { %v6429_v2 = vmov 0.0   ;;  %vm56_vm0 = vcmask 64512   ;;  %vm5063_vm1 = vmmov 0   ;;  %s6416_s0 = inlined_call_operand.vmem [shape: f32[8,8], index: 0, kind: input, shape index: {}]   ;;  %s6417_s1 = inlined_call_operand.vmem [shape: f32[40,8], index: 1, kind: input, shape index: {}]   ;;  %s6418_s2 = inlined_call_operand.vmem [shape: f32[8,96], index: 2, kind: input, shape index: {}]   ;;  %s6419_s3 = inlined_call_operand.vmem [shape: f32[1,96], index: 3, kind: input, shape index: {}]   ;;  %s6420_s4 = inlined_call_operand.vmem [shape: f32[8,96], index: 4, kind: input, shape index: {}]   ;;  %s6421_s5 = inlined_call_operand.vmem [shape: f32[1,96], index: 5, kind: input, shape index: {}]   ;;  %s6422_s6 = inlined_call_operand.vmem [shape: f32[8,96], index: 6, kind: input, shape index: {}]   ;;  %s6423_s7 = inlined_call_operand.vmem [shape: f32[1,96], index: 7, kind: input, shape index: {}]   ;;  %s6424_s8 = inlined_call_operand.vmem [shape: f32[96,128], index: 8, kind: input, shape index: {}]   ;;  %s6425_s9 = inlined_call_operand.vmem [shape: f32[128,96], index: 9, kind: input, shape index: {}]   ;;  %s6426_s10 = inlined_call_operand.vmem [shape: f32[96,128], index: 10, kind: input, shape index: {}]   ;;  %s6427_s11 = inlined_call_operand.vmem [shape: f32[1,128], index: 11, kind: input, shape index: {}]   ;;  %s6428_s12 = inlined_call_operand.hbm [shape: f32[8,128], index: 12, kind: output, shape index: {}]  }
   0x1   :  { %v48_v0 = vld [vmem:[%s6418_s2] sm:$0xff]  ;;  %4724 = vmatprep.subr.mxu0 %v6429_v2  ;;  %4729 = vmatprep.subr.mxu1 %v6429_v2 }
   0x2   :  { %v130_v1 = vld [vmem:[%s6420_s4] sm:$0xff]  ;;  %4725 = vmatpush3.msra.mxu0 %v48_v0  ;;  %4726 = vmatprep.mubr.msk.f32.mxu0 %vm5063_vm1, %v6429_v2 }
   0x3   :  { %v42_v3 = vld [vmem:[%s6416_s0] sm:$0xff]  ;;  %4730 = vmatpush3.msra.mxu1 %v130_v1  ;;  %4731 = vmatprep.mubr.msk.f32.mxu1 %vm5063_vm1, %v6429_v2 }
   0x4   :  { %v5146_v4 = vld [vmem:[%s6417_s1] sm:$0xff] }
   0x5   :  { %17 = vsyncpa [#allocation3], 0  ;;  %4727 = vmatmul.mubr.msk.f32.vlgmr.msra.gmra.mrb[0].mxu0 %vm56_vm0, %v42_v3  ;;  %4732 = vmatmul.mubr.msk.f32.vlgmr.msra.gmra.mrb[0].mxu1 %vm56_vm0, %v5146_v4  ;;  %v5160_v5 = vld [vmem:[%s6417_s1 + $0x8] sm:$0xff]  ;;  %v5172_v6 = vld [vmem:[%s6417_s1 + $0x10] sm:$0xff]  ;;  %v6431_v12 = vmov 0.0|0.0   ;;  %v346_v30 = vlaneseq  ;;  %vm1402_vm2 = vcmask 785408  }
   0x6   :  { %4734 = vmatprep.mubr.msk.f32.mxu1 %vm5063_vm1, %v6429_v2  ;;  %4746 = vmatprep.subr.mxu0 %v6429_v2  ;;  %v5181_v7 = vld [vmem:[%s6417_s1 + $0x18] sm:$0xff]  ;;  %v47_v8 = vld [vmem:[%s6417_s1 + $0x20] sm:$0xff]  ;;  %v1106_v10 = vld [vmem:[%s6424_s8 + $0x8] sm:$0xff]  ;;  %v5065_v28 = vmov 1966171168   ;;  %vm2113_vm3 = vcmask 1044480  }
   0x7   :  { %4748 = vmatprep.mubr.msk.f32.mxu0 %vm5063_vm1, %v6429_v2  ;;  %v1105_v9 = vld [vmem:[%s6424_s8] sm:$0xff]  ;;  %4876 = vmatprep.subr.bf16.mxu1 %v6431_v12  ;;  %v1107_v13 = vld [vmem:[%s6424_s8 + $0x10] sm:$0xff]  ;;  %v1108_v14 = vld [vmem:[%s6424_s8 + $0x18] sm:$0xff]  ;;  %v344_v29 = vunpack.c.l.s4 %v5065_v28  ;;  %v347_v32 = vshrl.u32 %v346_v30, 7  ;;  %vm4445_vm4 = vcmask 782336   ;;  %vm4529_vm5 = vcmask 1041409  }
   0x8   :  { %v4877_v11 = vpack.c.bf16 %v1106_v10, %v1105_v9  ;;  %v4880_v15 = vpack.c.bf16 %v1108_v14, %v1107_v13  ;;  %v1109_v16 = vld [vmem:[%s6424_s8 + $0x20] sm:$0xff]  ;;  %v1110_v17 = vld [vmem:[%s6424_s8 + $0x28] sm:$0xff]  ;;  %v1111_v19 = vld [vmem:[%s6424_s8 + $0x30] sm:$0xff]  ;;  %vm4531_vm6 = vcmask 1042434   ;;  %vm4533_vm7 = vcmask 1043459   ;;  %s5066_s27 = smov [#allocation2]  }
   0x9   :  { %4735 = vmatmul.mubr.msk.f32.gmra.mrb[2].mxu1 %vm56_vm0, %v5160_v5  ;;  %v4883_v18 = vpack.c.bf16 %v1110_v17, %v1109_v16  ;;  %v1112_v20 = vld [vmem:[%s6424_s8 + $0x38] sm:$0xff]  ;;  %v1113_v22 = vld [vmem:[%s6424_s8 + $0x40] sm:$0xff]  ;;  %v1114_v23 = vld [vmem:[%s6424_s8 + $0x48] sm:$0xff]  ;;  %v345_v31 = vunpack.c.0.s8 %v344_v29  ;;  %v393_v46 = vsub.s32 0, %v347_v32  ;;  %vm4535_vm8 = vcmask 1044484  }
   0xa   :  { %4737 = vmatprep.mubr.msk.f32.mxu1 %vm5063_vm1, %v6429_v2  ;;  %4878 = vmatpush3.bf16.msra.mxu1 %v4877_v11  ;;  %v4886_v21 = vpack.c.bf16 %v1112_v20, %v1111_v19  ;;  %v4889_v24 = vpack.c.bf16 %v1114_v23, %v1113_v22  ;;  %v1115_v25 = vld [vmem:[%s6424_s8 + $0x50] sm:$0xff]  ;;  %v1116_v26 = vld [vmem:[%s6424_s8 + $0x58] sm:$0xff]  ;;  %v4630_v33 = vld [vmem:[%s6419_s3] ss:$0 sm:$0xff]  ;;  %vm4537_vm9 = vcmask 1045509   ;;  %vm4539_vm10 = vcmask 1046534  }
   0xb   :  { %4879 = vmatprep.subr.bf16.mxu1 %v6431_v12  ;;  %v4892_v27 = vpack.c.bf16 %v1116_v26, %v1115_v25  ;;  %v5242_v34 = vld [vmem:[%s6421_s5] ss:$0 sm:$0xff]  ;;  %v5244_v35 = vsub.s32 %v345_v31, %v347_v32  ;;  %vm4541_vm11 = vcmask 1047559  }
   0xd   :  { %4738 = vmatmul.mubr.msk.f32.gmra.mrb[4].mxu1 %vm56_vm0, %v5172_v6 }
   0xe   :  { %4740 = vmatprep.mubr.msk.f32.mxu1 %vm5063_vm1, %v6429_v2  ;;  %4881 = vmatpush3.bf16.msra.mxu1 %v4880_v15 }
   0xf   :  { %4882 = vmatprep.subr.bf16.mxu1 %v6431_v12 }
  0x11   :  { %4741 = vmatmul.mubr.msk.f32.gmra.mrb[6].mxu1 %vm56_vm0, %v5181_v7 }
  0x12   :  { %4743 = vmatprep.mubr.msk.f32.mxu1 %vm5063_vm1, %v6429_v2  ;;  %4884 = vmatpush3.bf16.msra.mxu1 %v4883_v18 }
  0x13   :  { %4885 = vmatprep.subr.bf16.mxu1 %v6431_v12 }
  0x15   :  { %4744 = vmatmul.mubr.msk.f32.gmra.mrb[8].mxu1 %vm56_vm0, %v47_v8 }
  0x16   :  { %4787 = vmatprep.mubr.msk.f32.mxu1 %vm5063_vm1, %v6429_v2  ;;  %4887 = vmatpush3.bf16.msra.mxu1 %v4886_v21 }
  0x17   :  { %4888 = vmatprep.subr.bf16.mxu1 %v6431_v12 }
  0x1a   :  { %4890 = vmatpush3.bf16.msra.mxu1 %v4889_v24 }
  0x1b   :  { %4891 = vmatprep.subr.bf16.mxu1 %v6431_v12 }
  0x1e   :  { %4893 = vmatpush3.bf16.msra.mxu1 %v4892_v27 }
  0x1f   :  { %4918 = vmatprep.subr.bf16.mxu1 %v6431_v12 }
  0xd8   :  { %v126_v36 = vpop.f32.mrb[0].mxu0  ;;  %v219_v37 = vpop.f32.mrb[0].mxu1 }
  0xd9   :  { %v127_v38 = vadd.f32 %v4630_v33, %v126_v36  ;;  %v4728_v39 = vpop.f32.mrb[1].mxu0  ;;  %v220_v40 = vadd.f32 %v5242_v34, %v219_v37  ;;  %v4733_v41 = vpop.f32.mrb[1].mxu1 }
  0xdb   :  { %v342_v42 = vcombine.high %v127_v38, %v127_v38  ;;  %v349_v43 = vrot.slane %v127_v38, %v5244_v35  ;;  %v780_v44 = vcombine.high %v220_v40, %v220_v40  ;;  %v787_v45 = vrot.slane %v220_v40, %v5244_v35 }
  0xdc   :  { %v224_v47 = vpop.f32.mrb[2].mxu1 }
  0xdd   :  { %v356_v48 = vrot.slane %v342_v42, %v5244_v35  ;;  %v357_v49 = vcombine.high %v349_v43, %v349_v43  ;;  %v365_v50 = vrot.slane %v349_v43, %v5244_v35  ;;  %v794_v51 = vrot.slane %v780_v44, %v5244_v35  ;;  %v4736_v52 = vpop.f32.mrb[3].mxu1 }
  0xde   :  { %v795_v53 = vcombine.high %v787_v45, %v787_v45  ;;  %v5253_v54 = vrot.slane %v787_v45, %v5244_v35  ;;  %v5256_v55 = vadd.f32 %v5242_v34, %v224_v47 }
  0xdf   :  { %v358_v56 = vcombine.high %v356_v48, %v356_v48  ;;  %v372_v57 = vrot.slane %v356_v48, %v5244_v35  ;;  %v379_v58 = vrot.slane %v357_v49, %v5244_v35  ;;  %v387_v59 = vcombine.high %v365_v50, %v365_v50 }
  0xe0   :  { %v394_v60 = vrot.slane %v365_v50, %v393_v46  ;;  %v796_v61 = vcombine.high %v794_v51, %v794_v51  ;;  %v810_v62 = vrot.slane %v794_v51, %v5244_v35  ;;  %v817_v63 = vrot.slane %v795_v53, %v5244_v35  ;;  %v5262_v0 = vpop.f32.mrb[4].mxu1 }
  0xe1   :  { %v386_v1 = vrot.slane %v358_v56, %v5244_v35  ;;  %v388_v3 = vcombine.high %v372_v57, %v372_v57  ;;  %v389_v8 = vcombine.high %v379_v58, %v379_v58  ;;  %v398_v9 = vrot.slane %v379_v58, %v393_v46  ;;  %v4739_v10 = vpop.f32.mrb[5].mxu1 }
  0xe2   :  { %v402_v11 = vrot.slane %v387_v59, %v393_v46  ;;  %v5265_v13 = vrot.slane %v372_v57, %v393_v46  ;;  %v423_v14 = vcombine.high %v394_v60, %v394_v60  ;;  %v430_v15 = vrot.slane %v394_v60, %v5244_v35 }
  0xe3   :  { %v390_v16 = vcombine.high %v386_v1, %v386_v1  ;;  %v5268_v17 = vrot.slane %v389_v8, %v393_v46  ;;  %v5270_v18 = vrot.slane %v386_v1, %v393_v46  ;;  %v5272_v19 = vrot.slane %v388_v3, %v393_v46 }
  0xe4   :  { %v437_v20 = vrot.slane %v423_v14, %v5244_v35  ;;  %v438_v21 = vcombine.high %v430_v15, %v430_v15  ;;  %v462_v22 = vcombine.high %v398_v9, %v398_v9  ;;  %v469_v23 = vrot.slane %v398_v9, %v5244_v35  ;;  %v5276_v24 = vpop.f32.mrb[6].mxu1 }
  0xe5   :  { %v5278_v25 = vrot.slane %v390_v16, %v393_v46  ;;  %v501_v26 = vcombine.high %v402_v11, %v402_v11  ;;  %v508_v27 = vrot.slane %v402_v11, %v5244_v35  ;;  %v540_v28 = vcombine.high %v5268_v17, %v5268_v17  ;;  %v4742_v29 = vpop.f32.mrb[7].mxu1 }
  0xe6   :  { %v477_v30 = vcombine.high %v469_v23, %v469_v23  ;;  %v5285_v31 = vrot.slane %v5268_v17, %v5244_v35  ;;  %v579_v32 = vcombine.high %v5265_v13, %v5265_v13  ;;  %v5291_v33 = vrot.slane %v5265_v13, %v5244_v35 }
  0xe7   :  { %v5294_v36 = vrot.slane %v501_v26, %v5244_v35  ;;  %v516_v37 = vcombine.high %v508_v27, %v508_v27  ;;  %v618_v38 = vcombine.high %v5270_v18, %v5270_v18  ;;  %v657_v39 = vcombine.high %v5272_v19, %v5272_v19 }
  0xe8   :  { %v594_v40 = vcombine.high %v5291_v33, %v5291_v33  ;;  %v5304_v41 = vrot.slane %v5272_v19, %v5244_v35  ;;  %v696_v42 = vcombine.high %v5278_v25, %v5278_v25  ;;  %v445_v43 = vrot.slane %v430_v15, %v5244_v35  ;;  %v5309_v44 = vpop.f32.mrb[8].mxu1 }
  0xe9   :  { %v452_v45 = vrot.slane %v437_v20, %v5244_v35  ;;  %v459_v46 = vrot.slane %v438_v21, %v5244_v35  ;;  %v484_v47 = vrot.slane %v469_v23, %v5244_v35  ;;  %v498_v48 = vrot.slane %v477_v30, %v5244_v35  ;;  %v4745_v49 = vpop.f32.mrb[9].mxu1 }
  0xea   :  { %v672_v50 = vcombine.high %v5304_v41, %v5304_v41  ;;  %v460_v51 = vcombine.high %v445_v43, %v445_v43  ;;  %v824_v52 = vrot.slane %v796_v61, %v5244_v35  ;;  %v825_v53 = vcombine.high %v5253_v54, %v5253_v54 }
  0xeb   :  { %v461_v56 = vcombine.high %v459_v46, %v459_v46  ;;  %v499_v57 = vcombine.high %v484_v47, %v484_v47  ;;  %v826_v58 = vcombine.high %v810_v62, %v810_v62  ;;  %v827_v59 = vcombine.high %v817_v63, %v817_v63 }
  0xec   :  { %v828_v60 = vcombine.high %v824_v52, %v824_v52  ;;  %v1065_v1 = vmul.f32 %v5253_v54, %v445_v43  ;;  %v1066_v3 = vmul.f32 %v817_v63, %v459_v46  ;;  %v1067_v8 = vmul.f32 %v825_v53, %v460_v51 }
  0xed   :  { %v1068_v9 = vmul.f32 %v827_v59, %v461_v56  ;;  %v1069_v10 = vmul.f32 %v810_v62, %v452_v45  ;;  %v1070_v11 = vmul.f32 %v824_v52, %v484_v47  ;;  %v1071_v14 = vmul.f32 %v826_v58, %v498_v48 }
  0xee   :  { %v1072_v15 = vmul.f32 %v828_v60, %v499_v57  ;;  %v1157_v16 = vcombine.low %v1065_v1, %v1066_v3  ;;  %v476_v61 = vrot.slane %v462_v22, %v5244_v35  ;;  %v500_v17 = vcombine.high %v498_v48, %v498_v48 }
  0xef   :  { %v1158_v20 = vcombine.low %v1067_v8, %v1068_v9  ;;  %v1159_v21 = vcombine.low %v1069_v10, %v1070_v11  ;;  %v523_v23 = vrot.slane %v508_v27, %v5244_v35  ;;  %v530_v26 = vrot.slane %v5294_v36, %v5244_v35 }
  0xf0   :  { %v1160_v54 = vcombine.low %v1071_v14, %v1072_v15  ;;  %v1167_v63 = vrot.slane %v1157_v16, %v5244_v35  ;;  %v491_v62 = vrot.slane %v476_v61, %v5244_v35  ;;  %v537_v29 = vrot.slane %v516_v37, %v5244_v35 }
  0xf1   :  { %v1174_v30 = vrot.slane %v1158_v20, %v5244_v35  ;;  %v1181_v22 = vrot.slane %v1159_v21, %v5244_v35  ;;  %v538_v43 = vcombine.high %v523_v23, %v523_v23  ;;  %v5332_v45 = vrot.slane %v5285_v31, %v5244_v35 }
  0xf2   :  { %v1188_v27 = vrot.slane %v1160_v54, %v5244_v35  ;;  %v539_v36 = vcombine.high %v537_v29, %v537_v29  ;;  %v829_v46 = vcombine.high %v5256_v55, %v5256_v55  ;;  %v836_v47 = vrot.slane %v5256_v55, %v5244_v35 }
  0xf3   :  { %v1189_v48 = vcombine.low %v1167_v63, %v1174_v30  ;;  %v230_v37 = vadd.f32 %v5242_v34, %v5262_v0  ;;  %v5342_v49 = vrot.slane %v540_v28, %v5244_v35  ;;  %v555_v51 = vcombine.high %v5285_v31, %v5285_v31 }
  0xf4   :  { %v1190_v52 = vcombine.low %v1181_v22, %v1188_v27  ;;  %v843_v53 = vrot.slane %v829_v46, %v5244_v35  ;;  %v844_v56 = vcombine.high %v836_v47, %v836_v47  ;;  %v852_v57 = vrot.slane %v836_v47, %v5244_v35 }
  0xf5   :  { %v1197_v58 = vrot.slane %v1189_v48, %v5244_v35  ;;  %v569_v55 = vrot.slane %v5342_v49, %v5244_v35  ;;  %v576_v59 = vrot.slane %v555_v51, %v5244_v35  ;;  %v577_v0 = vcombine.high %v5332_v45, %v5332_v45 }
  0xf6   :  { %v1204_v28 = vrot.slane %v1190_v52, %v5244_v35  ;;  %v845_v60 = vcombine.high %v843_v53, %v843_v53  ;;  %v859_v31 = vrot.slane %v843_v53, %v5244_v35  ;;  %v866_v1 = vrot.slane %v844_v56, %v5244_v35 }
  0xf7   :  { %v874_v3 = vcombine.high %v852_v57, %v852_v57  ;;  %v1073_v8 = vmul.f32 %v852_v57, %v500_v17  ;;  %v578_v9 = vcombine.high %v576_v59, %v576_v59  ;;  %v601_v10 = vrot.slane %v5291_v33, %v5244_v35 }
  0xf8   :  { %v1205_v11 = vcombine.low %v1197_v58, %v1204_v28  ;;  %v873_v14 = vrot.slane %v845_v60, %v5244_v35  ;;  %v875_v15 = vcombine.high %v859_v31, %v859_v31  ;;  %v876_v16 = vcombine.high %v866_v1, %v866_v1 }
  0xf9   :  { %v1074_v61 = vmul.f32 %v866_v1, %v491_v62  ;;  %v1075_v20 = vmul.f32 %v874_v3, %v523_v23  ;;  %v1077_v21 = vmul.f32 %v859_v31, %v538_v43  ;;  %v615_v54 = vrot.slane %v594_v40, %v5244_v35 }
  0xfa   :  { %v877_v63 = vcombine.high %v873_v14, %v873_v14  ;;  %v1076_v30 = vmul.f32 %v876_v16, %v537_v29  ;;  %v1078_v17 = vmul.f32 %v873_v14, %v539_v36  ;;  %v5364_v22 = vmul.f32 %v875_v15, %v530_v26  ;;  %4788 = vmatmul.mubr.msk.f32.vlgmr.msra.gmra.mrb[10].mxu1 %vm1402_vm2, %v1205_v11 }
  0xfb   :  { %v1206_v27 = vcombine.low %v1073_v8, %v1074_v61  ;;  %v616_v46 = vcombine.high %v601_v10, %v601_v10  ;;  %v617_v47 = vcombine.high %v615_v54, %v615_v54  ;;  %v878_v48 = vcombine.high %v230_v37, %v230_v37  ;;  %4790 = vmatprep.mubr.msk.f32.mxu1 %vm5063_vm1, %v6429_v2 }
  0xfc   :  { %v5370_v23 = vmul.f32 %v877_v63, %v5332_v45  ;;  %v1207_v62 = vcombine.low %v1075_v20, %v1076_v30  ;;  %v1208_v33 = vcombine.low %v1077_v21, %v1078_v17  ;;  %v885_v40 = vrot.slane %v230_v37, %v5244_v35 }
  0xfd   :  { %v5374_v29 = vrot.slane %v1206_v27, %v5244_v35  ;;  %v892_v26 = vrot.slane %v878_v48, %v5244_v35  ;;  %v235_v43 = vadd.f32 %v5242_v34, %v5276_v24  ;;  %v593_v36 = vrot.slane %v579_v32, %v5244_v35 }
  0xfe   :  { %v1209_v45 = vcombine.low %v5364_v22, %v5370_v23  ;;  %v5386_v49 = vrot.slane %v1207_v62, %v5244_v35  ;;  %v5389_v37 = vrot.slane %v1208_v33, %v5244_v35  ;;  %v893_v51 = vcombine.high %v885_v40, %v885_v40 }
  0xff   :  { %v894_v52 = vcombine.high %v892_v26, %v892_v26  ;;  %v901_v53 = vrot.slane %v885_v40, %v5244_v35  ;;  %v908_v24 = vrot.slane %v892_v26, %v5244_v35  ;;  %v608_v56 = vrot.slane %v593_v36, %v5244_v35 }
 0x100   :  { %v915_v13 = vrot.slane %v893_v51, %v5244_v35  ;;  %v625_v32 = vrot.slane %v5270_v18, %v5244_v35  ;;  %v632_v57 = vrot.slane %v618_v38, %v5244_v35  ;;  %v5403_v58 = vrot.slane %v5304_v41, %v5244_v35 }
 0x101   :  { %v922_v28 = vrot.slane %v894_v52, %v5244_v35  ;;  %v923_v60 = vcombine.high %v901_v53, %v901_v53  ;;  %v924_v31 = vcombine.high %v908_v24, %v908_v24  ;;  %v1081_v1 = vmul.f32 %v901_v53, %v576_v59 }
 0x102   :  { %v925_v3 = vcombine.high %v915_v13, %v915_v13  ;;  %v1082_v8 = vmul.f32 %v915_v13, %v577_v0  ;;  %v1085_v11 = vmul.f32 %v908_v24, %v601_v10  ;;  %v633_v14 = vcombine.high %v625_v32, %v625_v32 }
 0x103   :  { %v926_v15 = vcombine.high %v922_v28, %v922_v28  ;;  %v1083_v16 = vmul.f32 %v923_v60, %v578_v9  ;;  %v1086_v61 = vmul.f32 %v922_v28, %v615_v54  ;;  %v5406_v20 = vmul.f32 %v924_v31, %v616_v46 }
 0x104   :  { %v1084_v18 = vmul.f32 %v925_v3, %v569_v55  ;;  %v1255_v38 = vcombine.low %v1081_v1, %v1082_v8  ;;  %v640_v21 = vrot.slane %v625_v32, %v5244_v35  ;;  %v647_v63 = vrot.slane %v632_v57, %v5244_v35 }
 0x105   :  { %v5410_v30 = vmul.f32 %v926_v15, %v617_v47  ;;  %v1257_v17 = vcombine.low %v1085_v11, %v1086_v61  ;;  %v654_v59 = vrot.slane %v633_v14, %v5244_v35  ;;  %v5417_v0 = vrot.slane %v672_v50, %v5244_v35 }
 0x106   :  { %v1256_v9 = vcombine.low %v1083_v16, %v1084_v18  ;;  %v5420_v10 = vrot.slane %v1255_v38, %v5244_v35  ;;  %v655_v55 = vcombine.high %v640_v21, %v640_v21  ;;  %v927_v54 = vcombine.high %v235_v43, %v235_v43 }
 0x107   :  { %v1258_v27 = vcombine.low %v5406_v20, %v5410_v30  ;;  %v5425_v46 = vrot.slane %v1257_v17, %v5244_v35  ;;  %v656_v47 = vcombine.high %v654_v59, %v654_v59  ;;  %v934_v48 = vrot.slane %v235_v43, %v5244_v35 }
 0x108   :  { %v5429_v62 = vrot.slane %v1256_v9, %v5244_v35  ;;  %v941_v41 = vrot.slane %v927_v54, %v5244_v35  ;;  %v240_v50 = vadd.f32 %v5242_v34, %v5309_v44  ;;  %v671_v33 = vrot.slane %v657_v39, %v5244_v35 }
 0x109   :  { %v942_v40 = vcombine.high %v934_v48, %v934_v48  ;;  %v950_v26 = vrot.slane %v934_v48, %v5244_v35  ;;  %v694_v36 = vcombine.high %v5403_v58, %v5403_v58  ;;  %v695_v43 = vcombine.high %v5417_v0, %v5417_v0 }
 0x10a   :  { %v943_v51 = vcombine.high %v941_v41, %v941_v41  ;;  %v957_v52 = vrot.slane %v941_v41, %v5244_v35  ;;  %v686_v53 = vrot.slane %v671_v33, %v5244_v35  ;;  %v703_v34 = vrot.slane %v5278_v25, %v5244_v35 }
 0x10b   :  { %v964_v19 = vrot.slane %v942_v40, %v5244_v35  ;;  %v972_v39 = vcombine.high %v950_v26, %v950_v26  ;;  %v1089_v44 = vmul.f32 %v950_v26, %v608_v56  ;;  %v710_v24 = vrot.slane %v696_v42, %v5244_v35 }
 0x10c   :  { %v971_v13 = vrot.slane %v943_v51, %v5244_v35  ;;  %v973_v32 = vcombine.high %v957_v52, %v957_v52  ;;  %v1093_v57 = vmul.f32 %v957_v52, %v656_v47  ;;  %v711_v28 = vcombine.high %v703_v34, %v703_v34 }
 0x10d   :  { %v974_v60 = vcombine.high %v964_v19, %v964_v19  ;;  %v1090_v31 = vmul.f32 %v964_v19, %v640_v21  ;;  %v1091_v1 = vmul.f32 %v972_v39, %v654_v59  ;;  %v718_v3 = vrot.slane %v703_v34, %v5244_v35 }
 0x10e   :  { %v975_v8 = vcombine.high %v971_v13, %v971_v13  ;;  %v1094_v11 = vmul.f32 %v971_v13, %v647_v63  ;;  %v1095_v14 = vmul.f32 %v973_v32, %v5403_v58  ;;  %v725_v56 = vrot.slane %v710_v24, %v5244_v35 }
 0x10f   :  { %v1092_v15 = vmul.f32 %v974_v60, %v655_v55  ;;  %v1304_v16 = vcombine.low %v1089_v44, %v1090_v31  ;;  %v732_v25 = vrot.slane %v711_v28, %v5244_v35  ;;  %v733_v42 = vcombine.high %v718_v3, %v718_v3 }
 0x110   :  { %v1096_v61 = vmul.f32 %v975_v8, %v5417_v0  ;;  %v1306_v20 = vcombine.low %v1093_v57, %v1094_v11  ;;  %v976_v18 = vcombine.high %v240_v50, %v240_v50  ;;  %v983_v38 = vrot.slane %v240_v50, %v5244_v35 }
 0x111   :  { %v1305_v21 = vcombine.low %v1091_v1, %v1092_v15  ;;  %v1314_v30 = vrot.slane %v1304_v16, %v5244_v35  ;;  %v734_v17 = vcombine.high %v732_v25, %v732_v25  ;;  %v1237_v58 = vrot.slane %v1209_v45, %v5244_v35 }
 0x112   :  { %v1307_v63 = vcombine.low %v1095_v14, %v1096_v61  ;;  %v1328_v59 = vrot.slane %v1306_v20, %v5244_v35  ;;  %v990_v9 = vrot.slane %v976_v18, %v5244_v35  ;;  %v991_v55 = vcombine.high %v983_v38, %v983_v38 }
 0x113   :  { %v1321_v0 = vrot.slane %v1305_v21, %v5244_v35  ;;  %v999_v54 = vrot.slane %v983_v38, %v5244_v35  ;;  %v1238_v47 = vcombine.low %v5374_v29, %v5386_v49  ;;  %v1239_v48 = vcombine.low %v5389_v37, %v1237_v58 }
 0x114   :  { %v992_v41 = vcombine.high %v990_v9, %v990_v9  ;;  %v1006_v50 = vrot.slane %v990_v9, %v5244_v35  ;;  %v1013_v22 = vrot.slane %v991_v55, %v5244_v35  ;;  %v1286_v23 = vrot.slane %v1258_v27, %v5244_v35 }
 0x115   :  { %v1021_v45 = vcombine.high %v999_v54, %v999_v54  ;;  %v1097_v33 = vmul.f32 %v999_v54, %v694_v36  ;;  %v1246_v40 = vrot.slane %v1238_v47, %v5244_v35  ;;  %v1253_v26 = vrot.slane %v1239_v48, %v5244_v35 }
 0x116   :  { %v1020_v51 = vrot.slane %v992_v41, %v5244_v35  ;;  %v1022_v52 = vcombine.high %v1006_v50, %v1006_v50  ;;  %v1023_v34 = vcombine.high %v1013_v22, %v1013_v22  ;;  %v1098_v29 = vmul.f32 %v1013_v22, %v695_v43 }
 0x117   :  { %v1099_v49 = vmul.f32 %v1021_v45, %v686_v53  ;;  %v1101_v37 = vmul.f32 %v1006_v50, %v732_v25  ;;  %v1254_v19 = vcombine.low %v1246_v40, %v1253_v26  ;;  %v1287_v39 = vcombine.low %v5420_v10, %v5429_v62 }
 0x118   :  { %v1024_v44 = vcombine.high %v1020_v51, %v1020_v51  ;;  %v1100_v24 = vmul.f32 %v1023_v34, %v718_v3  ;;  %v1102_v27 = vmul.f32 %v1020_v51, %v733_v42  ;;  %v1103_v13 = vmul.f32 %v1022_v52, %v734_v17 }
 0x119   :  { %v1353_v36 = vcombine.low %v1097_v33, %v1098_v29  ;;  %4791 = vmatmul.mubr.msk.f32.gmra.mrb[12].mxu1 %vm1402_vm2, %v1254_v19  ;;  %v1288_v32 = vcombine.low %v5425_v46, %v1286_v23  ;;  %v1295_v57 = vrot.slane %v1287_v39, %v5244_v35  ;;  %v1335_v28 = vrot.slane %v1307_v63, %v5244_v35 }
 0x11a   :  { %v1104_v43 = vmul.f32 %v1024_v44, %v725_v56  ;;  %v1354_v53 = vcombine.low %v1099_v49, %v1100_v24  ;;  %v1355_v60 = vcombine.low %v1101_v37, %v1102_v27  ;;  %4793 = vmatprep.mubr.msk.f32.mxu1 %vm5063_vm1, %v6429_v2  ;;  %v1336_v10 = vcombine.low %v1314_v30, %v1321_v0 }
 0x11b   :  { %v1302_v62 = vrot.slane %v1288_v32, %v5244_v35  ;;  %v1337_v31 = vcombine.low %v1328_v59, %v1335_v28  ;;  %v1363_v3 = vrot.slane %v1353_v36, %v5244_v35 }
 0x11c   :  { %v1356_v1 = vcombine.low %v1103_v13, %v1104_v43  ;;  %v1370_v8 = vrot.slane %v1354_v53, %v5244_v35  ;;  %v1344_v11 = vrot.slane %v1336_v10, %v5244_v35  ;;  %v1377_v56 = vrot.slane %v1355_v60, %v5244_v35 }
 0x11d   :  { %v1303_v46 = vcombine.low %v1295_v57, %v1302_v62  ;;  %v1351_v14 = vrot.slane %v1337_v31, %v5244_v35 }
 0x11e   :  { %v1384_v15 = vrot.slane %v1356_v1, %v5244_v35  ;;  %v1385_v16 = vcombine.low %v1363_v3, %v1370_v8 }
 0x11f   :  { %4794 = vmatmul.mubr.msk.f32.gmra.mrb[14].mxu1 %vm1402_vm2, %v1303_v46  ;;  %v1352_v25 = vcombine.low %v1344_v11, %v1351_v14 }
 0x120   :  { %4796 = vmatprep.mubr.msk.f32.mxu1 %vm5063_vm1, %v6429_v2  ;;  %v1386_v42 = vcombine.low %v1377_v56, %v1384_v15  ;;  %v1393_v61 = vrot.slane %v1385_v16, %v5244_v35 }
 0x122   :  { %v1400_v20 = vrot.slane %v1386_v42, %v5244_v35 }
 0x123   :  { %4797 = vmatmul.mubr.msk.f32.gmra.mrb[16].mxu1 %vm1402_vm2, %v1352_v25 }
 0x124   :  { %4799 = vmatprep.mubr.msk.f32.mxu1 %vm5063_vm1, %v6429_v2  ;;  %v1401_v18 = vcombine.low %v1393_v61, %v1400_v20 }
 0x127   :  { %4800 = vmatmul.mubr.msk.f32.gmra.mrb[18].mxu1 %vm1402_vm2, %v1401_v18 }
 0x128   :  { %4873 = vmatprep.mubr.msk.f32.mxu1 %vm5063_vm1, %v6429_v2 }
 0x1cd   :  { %v1479_v38 = vpop.f32.mrb[10].mxu1 }
 0x1ce   :  { %v1508_v21 = vcombine.high %v1479_v38, %v1479_v38  ;;  %v1515_v30 = vrot.slane %v1479_v38, %v5244_v35  ;;  %v4789_v17 = vpop.f32.mrb[11].mxu1 }
 0x1d0   :  { %v1522_v58 = vrot.slane %v1508_v21, %v5244_v35  ;;  %v1523_v63 = vcombine.high %v1515_v30, %v1515_v30  ;;  %v1531_v59 = vrot.slane %v1515_v30, %v5244_v35 }
 0x1d2   :  { %v1545_v9 = vrot.slane %v1523_v63, %v5244_v35  ;;  %v1538_v55 = vrot.slane %v1522_v58, %v5244_v35  ;;  %v1524_v29 = vcombine.high %v1522_v58, %v1522_v58  ;;  %v1553_v36 = vcombine.high %v1531_v59, %v1531_v59 }
 0x1d4   :  { %v1793_v0 = vcombine.low %v1531_v59, %v1545_v9  ;;  %v4649_v54 = vcombine.high %v1531_v59, %v1545_v9  ;;  %v1815_v41 = vrot.slane %v1538_v55, %v5244_v35  ;;  %v5516_v44 = vrot.slane %v1524_v29, %v5244_v35 }
 0x1d5   :  { %v5521_v43 = vcombine.high %v1538_v55, %v1538_v55  ;;  %v1555_v53 = vcombine.high %v1545_v9, %v1545_v9 }
 0x1d6   :  { %v1801_v47 = vrot.slane %v1793_v0, %v5244_v35  ;;  %v1808_v48 = vrot.slane %v4649_v54, %v5244_v35  ;;  %v1830_v23 = vrot.slane %v1815_v41, %v5244_v35  ;;  %v5528_v8 = vcombine.high %v5516_v44, %v5516_v44 }
 0x1d7   :  { %v1832_v61 = vcombine.low %v5516_v44, %v5521_v43 }
 0x1d8   :  { %v1816_v50 = vcombine.low %v1801_v47, %v1808_v48 }
 0x1d9   :  { %v1840_v41 = vrot.slane %v1832_v61, %v5244_v35 }
 0x1da   :  { %v1823_v22 = vrot.slane %v1816_v50, %v5244_v35 }
 0x1dc   :  { %v1831_v45 = vcombine.low %v1823_v22, %v1830_v23 }
 0x1de   :  { %v2114_v33 = vsel %vm2113_vm3, %v1831_v45, -inf }
 0x1df   :  { %v2115_v40 = vrot.slane %v2114_v33, 4 }
 0x1e1   :  { %v2116_v26 = vmax.f32 %v2114_v33, %v2115_v40 }
 0x1e3   :  { %v2117_v51 = vrot.slane %v2116_v26, 2 }
 0x1e5   :  { %v2118_v52 = vmax.f32 %v2116_v26, %v2117_v51 }
 0x1e7   :  { %v2119_v34 = vrot.slane %v2118_v52, 1 }
 0x1e9   :  { %v2120_v49 = vmax.f32 %v2118_v52, %v2119_v34 }
 0x1eb   :  { %v2178_v37 = vcombine.high %v2120_v49, %v2120_v49  ;;  %v2185_v19 = vrot.slane %v2120_v49, %v5244_v35 }
 0x1ec   :  { %v1484_v39 = vpop.f32.mrb[12].mxu1 }
 0x1ed   :  { %v1557_v24 = vcombine.high %v1484_v39, %v1484_v39  ;;  %v1564_v27 = vrot.slane %v1484_v39, %v5244_v35  ;;  %v4792_v13 = vpop.f32.mrb[13].mxu1  ;;  %v2192_v32 = vrot.slane %v2178_v37, %v5244_v35  ;;  %v2193_v57 = vcombine.high %v2185_v19, %v2185_v19 }
 0x1ee   :  { %v2200_v28 = vrot.slane %v2185_v19, %v5244_v35 }
 0x1ef   :  { %v1571_v60 = vrot.slane %v1557_v24, %v5244_v35  ;;  %v1572_v10 = vcombine.high %v1564_v27, %v1564_v27  ;;  %v2207_v62 = vrot.slane %v2192_v32, %v5244_v35  ;;  %v2214_v31 = vrot.slane %v2193_v57, %v5244_v35  ;;  %v243_v57 = vld [vmem:[%s6422_s6] sm:$0xff] }
 0x1f0   :  { %v2215_v1 = vcombine.high %v2200_v28, %v2200_v28  ;;  %v2530_v3 = vsub.f32 %v1531_v59, %v2200_v28  ;;  %v5539_v18 = vrot.slane %v1564_v27, %v5244_v35  ;;  %4747 = vmatpush3.msra.mxu0 %v243_v57 }
 0x1f1   :  { %v1573_v46 = vcombine.high %v1571_v60, %v1571_v60  ;;  %v5531_v11 = vrot.slane %v1571_v60, %v5244_v35  ;;  %v5534_v14 = vrot.slane %v1572_v10, %v5244_v35  ;;  %v2216_v56 = vcombine.high %v2214_v31, %v2214_v31  ;;  %4749 = vmatmul.mubr.msk.f32.vlgmr.msra.gmra.mrb[2].mxu0 %vm56_vm0, %v5146_v4 }
 0x1f2   :  { %v2531_v15 = vsub.f32 %v1545_v9, %v2214_v31  ;;  %v2532_v16 = vsub.f32 %v1553_v36, %v2215_v1  ;;  %v2534_v25 = vsub.f32 %v1538_v55, %v2207_v62  ;;  %v1489_v42 = vpop.f32.mrb[14].mxu1  ;;  %v2570_v20 = vmul.f32 1.442695, %v2530_v3  ;;  %4894 = vmatprep.subr.bf16.mxu0 %v6431_v12  ;;  %4751 = vmatprep.mubr.msk.f32.mxu0 %vm5063_vm1, %v6429_v2 }
 0x1f3   :  { %v5542_v38 = vrot.slane %v1573_v46, %v5244_v35  ;;  %v4795_v21 = vpop.f32.mrb[15].mxu1  ;;  %v2533_v30 = vsub.f32 %v1555_v53, %v2216_v56  ;;  %v5546_v63 = vcombine.high %v5531_v11, %v5531_v11  ;;  %v1833_v9 = vcombine.low %v5528_v8, %v5539_v18 }
 0x1f4   :  { %v2572_v17 = vmul.f32 1.442695, %v2531_v15  ;;  %v2574_v58 = vmul.f32 1.442695, %v2532_v16  ;;  %4941 = vpow2.f32 %v2570_v20  ;;  %v2578_v59 = vmul.f32 1.442695, %v2534_v25 }
 0x1f5   :  { %v4650_v55 = vcombine.high %v5539_v18, %v5534_v14  ;;  %v2576_v0 = vmul.f32 1.442695, %v2533_v30  ;;  %v1854_v54 = vrot.slane %v5534_v14, %v5244_v35  ;;  %v1872_v47 = vcombine.low %v5531_v11, %v5542_v38  ;;  %4752 = vmatmul.mubr.msk.f32.gmra.mrb[4].mxu0 %vm56_vm0, %v5160_v5 }
 0x1f6   :  { %4943 = vpow2.f32 %v2572_v17  ;;  %v1494_v48 = vpop.f32.mrb[16].mxu1  ;;  %v1847_v50 = vrot.slane %v1833_v9, %v5244_v35  ;;  %v1893_v33 = vrot.slane %v5546_v63, %v5244_v35  ;;  %v1606_v26 = vcombine.high %v1489_v42, %v1489_v42  ;;  %4754 = vmatprep.mubr.msk.f32.mxu0 %vm5063_vm1, %v6429_v2 }
 0x1f7   :  { %4945 = vpow2.f32 %v2574_v58  ;;  %v4798_v22 = vpop.f32.mrb[17].mxu1  ;;  %v1879_v23 = vrot.slane %v4650_v55, %v5244_v35  ;;  %v1886_v45 = vrot.slane %v1872_v47, %v5244_v35  ;;  %v1613_v51 = vrot.slane %v1489_v42, %v5244_v35 }
 0x1f8   :  { %4947 = vpow2.f32 %v2576_v0  ;;  %v1855_v40 = vcombine.low %v1840_v41, %v1847_v50  ;;  %v1869_v52 = vrot.slane %v1854_v54, %v5244_v35  ;;  %v5566_v29 = vcombine.high %v5542_v38, %v5542_v38 }
 0x1f9   :  { %4949 = vpow2.f32 %v2578_v59  ;;  %v1894_v34 = vcombine.low %v1879_v23, %v1886_v45  ;;  %v1655_v49 = vcombine.high %v1494_v48, %v1494_v48  ;;  %v1620_v39 = vrot.slane %v1606_v26, %v5244_v35  ;;  %4755 = vmatmul.mubr.msk.f32.gmra.mrb[6].mxu0 %vm56_vm0, %v5172_v6 }
 0x1fa   :  { %v5568_v37 = vpop.f32.mrb[18].mxu1  ;;  %v1862_v19 = vrot.slane %v1855_v40, %v5244_v35  ;;  %v1621_v24 = vcombine.high %v1613_v51, %v1613_v51  ;;  %v5573_v27 = vrot.slane %v1613_v51, %v5244_v35  ;;  %v1908_v32 = vrot.slane %v1893_v33, %v5244_v35  ;;  %4757 = vmatprep.mubr.msk.f32.mxu0 %vm5063_vm1, %v6429_v2 }
 0x1fb   :  { %v4801_v13 = vpop.f32.mrb[19].mxu1  ;;  %v1901_v36 = vrot.slane %v1894_v34, %v5244_v35  ;;  %v1622_v53 = vcombine.high %v1620_v39, %v1620_v39  ;;  %v1662_v10 = vrot.slane %v1494_v48, %v5244_v35  ;;  %v1602_v62 = vcombine.high %v5539_v18, %v5539_v18 }
 0x1fc   :  { %v1870_v28 = vcombine.low %v1862_v19, %v1869_v52  ;;  %v5581_v60 = vrot.slane %v1621_v24, %v5244_v35  ;;  %v5588_v1 = vcombine.high %v5573_v27, %v5573_v27  ;;  %v1910_v3 = vcombine.low %v5566_v29, %v5573_v27 }
 0x1fd   :  { %v1909_v31 = vcombine.low %v1901_v36, %v1908_v32  ;;  %v5598_v15 = vrot.slane %v1622_v53, %v5244_v35  ;;  %v1669_v25 = vrot.slane %v1655_v49, %v5244_v35  ;;  %v1604_v58 = vcombine.high %v5534_v14, %v5534_v14  ;;  %4758 = vmatmul.mubr.msk.f32.gmra.mrb[8].mxu0 %vm56_vm0, %v5181_v7 }
 0x1fe   :  { %v5594_v46 = vpop.eup %4941  ;;  %v2121_v56 = vsel %vm2113_vm3, %v1870_v28, -inf  ;;  %v5602_v16 = vcombine.high %v5581_v60, %v5581_v60  ;;  %v1911_v20 = vcombine.low %v5581_v60, %v5588_v1  ;;  %v1918_v21 = vrot.slane %v1910_v3, %v5244_v35  ;;  %4760 = vmatprep.mubr.msk.f32.mxu0 %vm5063_vm1, %v6429_v2 }
 0x1ff   :  { %v2122_v4 = vrot.slane %v2121_v56, 4  ;;  %v2128_v61 = vsel %vm2113_vm3, %v1909_v31, -inf  ;;  %v1670_v9 = vcombine.high %v1662_v10, %v1662_v10  ;;  %v5623_v54 = vrot.slane %v1620_v39, %v5244_v35 }
 0x200   :  { %v5608_v42 = vpop.eup %4943  ;;  %v2129_v59 = vrot.slane %v2128_v61, 4  ;;  %v1925_v47 = vrot.slane %v1911_v20, %v5244_v35  ;;  %v1932_v48 = vrot.slane %v5602_v16, %v5244_v35  ;;  %v1671_v23 = vcombine.high %v1669_v25, %v1669_v25 }
 0x201   :  { %v5614_v30 = vpop.eup %4945  ;;  %v2690_v17 = vcombine.low %v5594_v46, %v5608_v42  ;;  %v2123_v0 = vmax.f32 %v2121_v56, %v2122_v4  ;;  %v5635_v45 = vrot.slane %v1662_v10, %v5244_v35  ;;  %v1949_v26 = vcombine.low %v5623_v54, %v5598_v15 }
 0x202   :  { %v5620_v55 = vpop.eup %4947  ;;  %v2130_v22 = vmax.f32 %v2128_v61, %v2129_v59  ;;  %v1933_v40 = vcombine.low %v1918_v21, %v1925_v47  ;;  %v4651_v5 = vcombine.high %v5623_v54, %v5598_v15  ;;  %v1652_v39 = vcombine.high %v5623_v54, %v5623_v54 }
 0x203   :  { %v5630_v41 = vpop.eup %4949  ;;  %v2691_v50 = vcombine.low %v5614_v30, %v5620_v55  ;;  %v2124_v33 = vrot.slane %v2123_v0, 2  ;;  %v2698_v51 = vrot.slane %v2690_v17, %v5244_v35  ;;  %v1947_v13 = vrot.slane %v1932_v48, %v5244_v35 }
 0x204   :  { %v2712_v34 = vrot.slane %v5630_v41, %v5244_v35  ;;  %v2131_v49 = vrot.slane %v2130_v22, 2  ;;  %v1940_v24 = vrot.slane %v1933_v40, %v5244_v35  ;;  %v1654_v57 = vcombine.high %v5598_v15, %v5598_v15 }
 0x205   :  { %v2705_v52 = vrot.slane %v2691_v50, %v5244_v35  ;;  %v2125_v19 = vmax.f32 %v2123_v0, %v2124_v33  ;;  %v5656_v28 = vrot.slane %v1670_v9, %v5244_v35  ;;  %v1957_v31 = vrot.slane %v1949_v26, %v5244_v35 }
 0x206   :  { %v2132_v32 = vmax.f32 %v2130_v22, %v2131_v49  ;;  %v1948_v10 = vcombine.low %v1940_v24, %v1947_v13  ;;  %v1964_v3 = vrot.slane %v4651_v5, %v5244_v35  ;;  %v2727_v6 = vrot.slane %v2712_v34, %v5244_v35  ;;  %v5037_v49 = vld [vmem:[%s6417_s1 + $0x20] sm:$0xff] }
 0x207   :  { %v2713_v36 = vcombine.low %v2698_v51, %v2705_v52  ;;  %v2126_v53 = vrot.slane %v2125_v19, 1  ;;  %v5665_v61 = vrot.slane %v1669_v25, %v5244_v35  ;;  %v5669_v17 = vrot.slane %v1671_v23, %v5244_v35  ;;  %4761 = vmatmul.mubr.msk.f32.gmra.mrb[10].mxu0 %vm56_vm0, %v5037_v49 }
 0x208   :  { %v2133_v4 = vrot.slane %v2132_v32, 1  ;;  %v2135_v21 = vsel %vm2113_vm3, %v1948_v10, -inf  ;;  %v5673_v59 = vcombine.high %v5635_v45, %v5635_v45  ;;  %v5679_v25 = vcombine.high %v5656_v28, %v5656_v28  ;;  %4834 = vmatprep.mubr.msk.f32.mxu0 %vm5063_vm1, %v6429_v2 }
 0x209   :  { %v2720_v56 = vrot.slane %v2713_v36, %v5244_v35  ;;  %v2127_v20 = vmax.f32 %v2125_v19, %v2126_v53  ;;  %v2136_v47 = vrot.slane %v2135_v21, 4  ;;  %v1971_v22 = vrot.slane %v5635_v45, %v5244_v35 }
 0x20a   :  { %v2134_v0 = vmax.f32 %v2132_v32, %v2133_v4  ;;  %v1972_v23 = vcombine.low %v1957_v31, %v1964_v3  ;;  %v1988_v36 = vcombine.low %v5656_v28, %v5673_v59 }
 0x20b   :  { %v2728_v9 = vcombine.low %v2720_v56, %v2727_v6  ;;  %v2217_v48 = vcombine.high %v2127_v20, %v2127_v20  ;;  %v2224_v50 = vrot.slane %v2127_v20, %v5244_v35  ;;  %v2137_v26 = vmax.f32 %v2135_v21, %v2136_v47 }
 0x20c   :  { %v2256_v7 = vcombine.high %v2134_v0, %v2134_v0  ;;  %v2263_v40 = vrot.slane %v2134_v0, %v5244_v35 }
 0x20d   :  { %v3010_v33 = vsel %vm2113_vm3, %v2728_v9, 0.0  ;;  %v2231_v51 = vrot.slane %v2217_v48, %v5244_v35  ;;  %v2232_v52 = vcombine.high %v2224_v50, %v2224_v50  ;;  %v2239_v34 = vrot.slane %v2224_v50, %v5244_v35 }
 0x20e   :  { %v3011_v5 = vrot.slane %v3010_v33, 4  ;;  %v2270_v19 = vrot.slane %v2256_v7, %v5244_v35  ;;  %v2271_v24 = vcombine.high %v2263_v40, %v2263_v40  ;;  %v2278_v13 = vrot.slane %v2263_v40, %v5244_v35 }
 0x20f   :  { %v2246_v53 = vrot.slane %v2231_v51, %v5244_v35  ;;  %v2253_v10 = vrot.slane %v2232_v52, %v5244_v35  ;;  %v2254_v31 = vcombine.high %v2239_v34, %v2239_v34  ;;  %v2535_v6 = vsub.f32 %v5516_v44, %v2239_v34 }
 0x210   :  { %v3012_v32 = vadd.f32 %v3011_v5, %v3010_v33  ;;  %v2292_v3 = vrot.slane %v2271_v24, %v5244_v35  ;;  %v2293_v56 = vcombine.high %v2278_v13, %v2278_v13  ;;  %v2138_v4 = vrot.slane %v2137_v26, 2 }
 0x211   :  { %v2255_v21 = vcombine.high %v2253_v10, %v2253_v10  ;;  %v2536_v9 = vsub.f32 %v5521_v43, %v2253_v10  ;;  %v2537_v0 = vsub.f32 %v5528_v8, %v2254_v31  ;;  %v2285_v47 = vrot.slane %v2270_v19, %v5244_v35 }
 0x212   :  { %v3013_v20 = vrot.slane %v3012_v32, 2  ;;  %v2294_v48 = vcombine.high %v2292_v3, %v2292_v3  ;;  %v2539_v50 = vsub.f32 %v5534_v14, %v2246_v53  ;;  %v1986_v33 = vrot.slane %v1971_v22, %v5244_v35 }
 0x213   :  { %v2538_v40 = vsub.f32 %v5539_v18, %v2255_v21  ;;  %v2540_v44 = vsub.f32 %v1602_v62, %v2278_v13  ;;  %v1979_v5 = vrot.slane %v1972_v23, %v5244_v35  ;;  %v2541_v43 = vsub.f32 %v1604_v58, %v2292_v3 }
 0x214   :  { %v3014_v7 = vadd.f32 %v3013_v20, %v3012_v32  ;;  %v2580_v8 = vmul.f32 1.442695, %v2535_v6  ;;  %v2582_v51 = vmul.f32 1.442695, %v2536_v9  ;;  %v2584_v52 = vmul.f32 1.442695, %v2537_v0 }
 0x215   :  { %v2542_v49 = vsub.f32 %v5531_v11, %v2293_v56  ;;  %v2139_v22 = vmax.f32 %v2137_v26, %v2138_v4  ;;  %v1989_v19 = vcombine.low %v5679_v25, %v5665_v61  ;;  %v2543_v24 = vsub.f32 %v5542_v38, %v2294_v48 }
 0x216   :  { %v3015_v34 = vrot.slane %v3014_v7, 1  ;;  %v2544_v18 = vsub.f32 %v5546_v63, %v2285_v47  ;;  %4951 = vpow2.f32 %v2580_v8  ;;  %v2586_v62 = vmul.f32 1.442695, %v2538_v40 }
 0x217   :  { %4953 = vpow2.f32 %v2582_v51  ;;  %v2588_v14 = vmul.f32 1.442695, %v2539_v50  ;;  %v2590_v58 = vmul.f32 1.442695, %v2540_v44  ;;  %v2592_v13 = vmul.f32 1.442695, %v2541_v43 }
 0x218   :  { %v3016_v23 = vadd.f32 %v3015_v34, %v3014_v7  ;;  %4955 = vpow2.f32 %v2584_v52  ;;  %v2140_v32 = vrot.slane %v2139_v22, 1  ;;  %v1987_v53 = vcombine.low %v1979_v5, %v1986_v33 }
 0x219   :  { %v1996_v11 = vrot.slane %v1988_v36, %v5244_v35  ;;  %v2003_v26 = vrot.slane %v1989_v19, %v5244_v35  ;;  %v2010_v38 = vrot.slane %v5669_v17, %v5244_v35  ;;  %v2594_v63 = vmul.f32 1.442695, %v2542_v49 }
 0x21a   :  { %4957 = vrcp.f32 %v3016_v23  ;;  %v2141_v10 = vmax.f32 %v2139_v22, %v2140_v32  ;;  %v2142_v31 = vsel %vm2113_vm3, %v1987_v53, -inf  ;;  %v2596_v3 = vmul.f32 1.442695, %v2543_v24 }
 0x21b   :  { %4959 = vpow2.f32 %v2586_v62  ;;  %v2011_v56 = vcombine.low %v1996_v11, %v2003_v26  ;;  %v2143_v6 = vrot.slane %v2142_v31, 4  ;;  %v2598_v4 = vmul.f32 1.442695, %v2544_v18 }
 0x21c   :  { %4961 = vpow2.f32 %v2588_v14  ;;  %v2295_v20 = vcombine.high %v2141_v10, %v2141_v10  ;;  %v2302_v21 = vrot.slane %v2141_v10, %v5244_v35  ;;  %v2025_v9 = vrot.slane %v2010_v38, %v5244_v35 }
 0x21d   :  { %4963 = vpow2.f32 %v2590_v58  ;;  %v2018_v36 = vrot.slane %v2011_v56, %v5244_v35  ;;  %v2144_v0 = vmax.f32 %v2142_v31, %v2143_v6  ;;  %v4652_v7 = vcombine.high %v5665_v61, %v5669_v17 }
 0x21e   :  { %4965 = vpow2.f32 %v2592_v13  ;;  %v2309_v47 = vrot.slane %v2295_v20, %v5244_v35  ;;  %v2310_v48 = vcombine.high %v2302_v21, %v2302_v21  ;;  %v2317_v50 = vrot.slane %v2302_v21, %v5244_v35 }
 0x21f   :  { %4967 = vpow2.f32 %v2594_v63  ;;  %v2026_v33 = vcombine.low %v2018_v36, %v2025_v9  ;;  %v2145_v40 = vrot.slane %v2144_v0, 2  ;;  %v1704_v22 = vcombine.high %v5568_v37, %v5568_v37 }
 0x220   :  { %4969 = vpow2.f32 %v2596_v3  ;;  %v5734_v44 = vpop.eup %4951  ;;  %v2324_v5 = vrot.slane %v2309_v47, %v5244_v35  ;;  %v2331_v43 = vrot.slane %v2310_v48, %v5244_v35  ;;  %v2332_v8 = vcombine.high %v2317_v50, %v2317_v50 }
 0x221   :  { %4971 = vpow2.f32 %v2598_v4  ;;  %v5738_v51 = vpop.eup %4953  ;;  %v2545_v52 = vsub.f32 %v5566_v29, %v2317_v50  ;;  %v2146_v34 = vmax.f32 %v2144_v0, %v2145_v40  ;;  %v2149_v49 = vsel %vm2113_vm3, %v2026_v33, -inf }
 0x222   :  { %v5744_v19 = vpop.eup %4955  ;;  %v2729_v24 = vcombine.low %v5734_v44, %v5738_v51  ;;  %v2333_v18 = vcombine.high %v2331_v43, %v2331_v43  ;;  %v2546_v62 = vsub.f32 %v5573_v27, %v2331_v43  ;;  %v2547_v23 = vsub.f32 %v5581_v60, %v2332_v8 }
 0x223   :  { %v2549_v29 = vsub.f32 %v5602_v16, %v2324_v5  ;;  %v2600_v58 = vmul.f32 1.442695, %v2545_v52  ;;  %v2147_v13 = vrot.slane %v2146_v34, 1  ;;  %v2150_v32 = vrot.slane %v2149_v49, 4 }
 0x224   :  { %v5750_v14 = vpop.eup %4957  ;;  %v2737_v11 = vrot.slane %v2729_v24, %v5244_v35  ;;  %v2548_v26 = vsub.f32 %v5588_v1, %v2333_v18  ;;  %v2602_v38 = vmul.f32 1.442695, %v2546_v62  ;;  %v2604_v63 = vmul.f32 1.442695, %v2547_v23 }
 0x225   :  { %v5753_v53 = vpop.eup %4959  ;;  %4973 = vpow2.f32 %v2600_v58  ;;  %v2608_v60 = vmul.f32 1.442695, %v2549_v29  ;;  %v2148_v31 = vmax.f32 %v2146_v34, %v2147_v13  ;;  %v2151_v6 = vmax.f32 %v2149_v49, %v2150_v32 }
 0x226   :  { %v5757_v10 = vpop.eup %4961  ;;  %v2730_v27 = vcombine.low %v5744_v19, %v5753_v53  ;;  %4975 = vpow2.f32 %v2602_v38  ;;  %v2606_v56 = vmul.f32 1.442695, %v2548_v26 }
 0x227   :  { %v5761_v16 = vpop.eup %4963  ;;  %v2751_v3 = vrot.slane %v5757_v10, %v5244_v35  ;;  %4977 = vpow2.f32 %v2604_v63  ;;  %v2334_v20 = vcombine.high %v2148_v31, %v2148_v31  ;;  %v2341_v21 = vrot.slane %v2148_v31, %v5244_v35 }
 0x228   :  { %v5765_v4 = vpop.eup %4965  ;;  %v2744_v1 = vrot.slane %v2730_v27, %v5244_v35  ;;  %4979 = vpow2.f32 %v2606_v56  ;;  %v2152_v47 = vrot.slane %v2151_v6, 2 }
 0x229   :  { %v5769_v36 = vpop.eup %4967  ;;  %v2766_v9 = vrot.slane %v2751_v3, %v5244_v35  ;;  %v2768_v0 = vcombine.low %v5761_v16, %v5765_v4  ;;  %4981 = vpow2.f32 %v2608_v60  ;;  %v2348_v33 = vrot.slane %v2334_v20, %v5244_v35 }
 0x22a   :  { %v5774_v48 = vpop.eup %4969  ;;  %v2752_v50 = vcombine.low %v2737_v11, %v2744_v1  ;;  %v2349_v40 = vcombine.high %v2341_v21, %v2341_v21  ;;  %v2153_v52 = vmax.f32 %v2151_v6, %v2152_v47  ;;  %v2356_v34 = vrot.slane %v2341_v21, %v5244_v35 }
 0x22b   :  { %v5777_v5 = vpop.eup %4971  ;;  %v2769_v43 = vcombine.low %v5769_v36, %v5774_v48  ;;  %v2776_v8 = vrot.slane %v2768_v0, %v5244_v35  ;;  %v2363_v18 = vrot.slane %v2348_v33, %v5244_v35 }
 0x22c   :  { %v2759_v49 = vrot.slane %v2752_v50, %v5244_v35  ;;  %v2790_v24 = vrot.slane %v5777_v5, %v5244_v35  ;;  %v2370_v62 = vrot.slane %v2349_v40, %v5244_v35  ;;  %v2154_v29 = vrot.slane %v2153_v52, 1 }
 0x22d   :  { %v2783_v23 = vrot.slane %v2769_v43, %v5244_v35  ;;  %v2371_v58 = vcombine.high %v2356_v34, %v2356_v34  ;;  %v2550_v13 = vsub.f32 %v5623_v54, %v2356_v34  ;;  %v2554_v31 = vsub.f32 %v5635_v45, %v2363_v18 }
 0x22e   :  { %v2767_v32 = vcombine.low %v2759_v49, %v2766_v9  ;;  %v2805_v11 = vrot.slane %v2790_v24, %v5244_v35  ;;  %v2372_v26 = vcombine.high %v2370_v62, %v2370_v62  ;;  %v2551_v38 = vsub.f32 %v5598_v15, %v2370_v62 }
 0x22f   :  { %v2791_v63 = vcombine.low %v2776_v8, %v2783_v23  ;;  %v2155_v27 = vmax.f32 %v2153_v52, %v2154_v29  ;;  %v2552_v60 = vsub.f32 %v1652_v39, %v2371_v58  ;;  %v5796_v3 = vpop.eup %4973  ;;  %v2610_v1 = vmul.f32 1.442695, %v2550_v13 }
 0x230   :  { %v3017_v56 = vsel %vm2113_vm3, %v2767_v32, 0.0  ;;  %v2553_v6 = vsub.f32 %v1654_v57, %v2372_v26  ;;  %v2612_v20 = vmul.f32 1.442695, %v2551_v38  ;;  %v5802_v21 = vpop.eup %4975  ;;  %v1711_v15 = vrot.slane %v5568_v37, %v5244_v35 }
 0x231   :  { %v2798_v9 = vrot.slane %v2791_v63, %v5244_v35  ;;  %v3018_v0 = vrot.slane %v3017_v56, 4  ;;  %v2373_v47 = vcombine.high %v2155_v27, %v2155_v27  ;;  %v2380_v54 = vrot.slane %v2155_v27, %v5244_v35  ;;  %v5806_v39 = vpop.eup %4977 }
 0x232   :  { %v2807_v45 = vcombine.low %v5796_v3, %v5802_v21  ;;  %4983 = vpow2.f32 %v2610_v1  ;;  %v1718_v57 = vrot.slane %v1704_v22, %v5244_v35  ;;  %v5816_v50 = vpop.eup %4979  ;;  %v2614_v24 = vmul.f32 1.442695, %v2552_v60 }
 0x233   :  { %v2806_v33 = vcombine.low %v2798_v9, %v2805_v11  ;;  %v3019_v40 = vadd.f32 %v3018_v0, %v3017_v56  ;;  %v2387_v43 = vrot.slane %v2373_v47, %v5244_v35  ;;  %v2388_v8 = vcombine.high %v2380_v54, %v2380_v54  ;;  %v5819_v52 = vpop.eup %4981 }
 0x234   :  { %v2808_v34 = vcombine.low %v5806_v39, %v5816_v50  ;;  %v2395_v49 = vrot.slane %v2380_v54, %v5244_v35  ;;  %4985 = vpow2.f32 %v2612_v20  ;;  %v2815_v37 = vrot.slane %v2807_v45, %v5244_v35 }
 0x235   :  { %v3020_v18 = vrot.slane %v3019_v40, 2  ;;  %v2402_v22 = vrot.slane %v2387_v43, %v5244_v35  ;;  %v2616_v62 = vmul.f32 1.442695, %v2553_v6  ;;  %v2829_v29 = vrot.slane %v5819_v52, %v5244_v35 }
 0x236   :  { %v2822_v23 = vrot.slane %v2808_v34, %v5244_v35  ;;  %v2409_v58 = vrot.slane %v2388_v8, %v5244_v35  ;;  %v2410_v13 = vcombine.high %v2395_v49, %v2395_v49  ;;  %v3024_v32 = vsel %vm2113_vm3, %v2806_v33, 0.0 }
 0x237   :  { %v2555_v11 = vsub.f32 %v5656_v28, %v2395_v49  ;;  %v1719_v26 = vcombine.high %v1711_v15, %v1711_v15  ;;  %v1720_v38 = vcombine.high %v1718_v57, %v1718_v57  ;;  %v2559_v56 = vsub.f32 %v5669_v17, %v2402_v22 }
 0x238   :  { %v2830_v63 = vcombine.low %v2815_v37, %v2822_v23  ;;  %v2411_v27 = vcombine.high %v2409_v58, %v2409_v58  ;;  %v2556_v60 = vsub.f32 %v5673_v59, %v2409_v58  ;;  %v3021_v6 = vadd.f32 %v3020_v18, %v3019_v40  ;;  %v3474_v58 = vld [vmem:[%s6425_s9] sm:$0xff] }
 0x239   :  { %v2557_v1 = vsub.f32 %v5679_v25, %v2410_v13  ;;  %4987 = vpow2.f32 %v2614_v24  ;;  %v2618_v20 = vmul.f32 1.442695, %v2554_v31  ;;  %v2844_v0 = vrot.slane %v2829_v29, %v5244_v35  ;;  %v3475_v13 = vld [vmem:[%s6425_s9 + $0x8] sm:$0xff] }
 0x23a   :  { %v2837_v9 = vrot.slane %v2830_v63, %v5244_v35  ;;  %v2558_v47 = vsub.f32 %v5665_v61, %v2411_v27  ;;  %4989 = vpow2.f32 %v2616_v62  ;;  %v3025_v28 = vrot.slane %v3024_v32, 4 }
 0x23b   :  { %4991 = vpow2.f32 %v2618_v20  ;;  %v2620_v54 = vmul.f32 1.442695, %v2555_v11  ;;  %v2622_v45 = vmul.f32 1.442695, %v2556_v60  ;;  %v2624_v43 = vmul.f32 1.442695, %v2557_v1 }
 0x23c   :  { %v5838_v33 = vpop.eup %4983  ;;  %v2845_v59 = vcombine.low %v2837_v9, %v2844_v0  ;;  %v2626_v40 = vmul.f32 1.442695, %v2558_v47  ;;  %v2628_v8 = vmul.f32 1.442695, %v2559_v56  ;;  %v5841_v25 = vrot.slane %v1711_v15, %v5244_v35  ;;  %v3476_v56 = vld [vmem:[%s6425_s9 + $0x10] sm:$0xff]  ;;  %v3477_v1 = vld [vmem:[%s6425_s9 + $0x18] sm:$0xff] }
 0x23d   :  { %6443 = vst [vmem:[#allocation5_spill] sm:$0xff] %v5838_v33  ;;  %4993 = vpow2.f32 %v2620_v54  ;;  %v5844_v31 = vrot.slane %v1718_v57, %v5244_v35  ;;  %v5847_v34 = vrot.slane %v1719_v26, %v5244_v35  ;;  %v3022_v24 = vrot.slane %v3021_v6, 1 }
 0x23e   :  { %v5849_v49 = vpop.eup %4985  ;;  %v3031_v18 = vsel %vm2113_vm3, %v2845_v59, 0.0  ;;  %4995 = vpow2.f32 %v2622_v45  ;;  %v5853_v37 = vrot.slane %v1720_v38, %v5244_v35  ;;  %v5859_v57 = vcombine.high %v5841_v25, %v5841_v25 }
 0x23f   :  { %6444 = vst [vmem:[#allocation6_spill] sm:$0xff] %v5849_v49  ;;  %v3032_v22 = vrot.slane %v3031_v18, 4  ;;  %4997 = vpow2.f32 %v2624_v43  ;;  %v2846_v15 = vcombine.low %v5838_v33, %v5849_v49  ;;  %v5863_v62 = vcombine.high %v5844_v31, %v5844_v31 }
 0x240   :  { %4999 = vpow2.f32 %v2626_v40  ;;  %v5867_v23 = vcombine.high %v5847_v34, %v5847_v34  ;;  %v5871_v29 = vcombine.high %v5853_v37, %v5853_v37  ;;  %v5879_v11 = vadd.f32 %v3025_v28, %v3024_v32  ;;  %v3478_v40 = vld [vmem:[%s6425_s9 + $0x20] sm:$0xff] }
 0x241   :  { %5001 = vpow2.f32 %v2628_v8  ;;  %v2028_v38 = vcombine.low %v5841_v25, %v5847_v34  ;;  %v5885_v63 = vadd.f32 %v3032_v22, %v3031_v18  ;;  %v2035_v27 = vrot.slane %v4652_v7, %v5244_v35 }
 0x242   :  { %v2066_v60 = vcombine.low %v5867_v23, %v5844_v31  ;;  %v2067_v32 = vcombine.low %v5853_v37, %v5863_v62  ;;  %v2049_v7 = vrot.slane %v5859_v57, %v5244_v35  ;;  %v2088_v0 = vrot.slane %v5871_v29, %v5244_v35 }
 0x243   :  { %v5901_v20 = vpop.eup %4987  ;;  %v2042_v9 = vrot.slane %v2028_v38, %v5244_v35  ;;  %v4895_v47 = vpack.c.bf16 %v3475_v13, %v3474_v58  ;;  %v3023_v54 = vadd.f32 %v3022_v24, %v3021_v6  ;;  %v4898_v6 = vpack.c.bf16 %v3477_v1, %v3476_v56  ;;  %v3479_v24 = vld [vmem:[%s6425_s9 + $0x28] sm:$0xff]  ;;  %v5928_v13 = vld [vmem:[%s6425_s9 + $0x30] sm:$0xff]  ;;  %v5933_v38 = vld [vmem:[%s6425_s9 + $0x38] sm:$0xff] }
 0x244   :  { %6445 = vst [vmem:[#allocation7_spill] sm:$0xff] %v5901_v20  ;;  %v5908_v28 = vpop.eup %4989  ;;  %v2074_v59 = vrot.slane %v2066_v60, %v5244_v35  ;;  %v2081_v43 = vrot.slane %v2067_v32, %v5244_v35  ;;  %v2064_v2 = vrot.slane %v2049_v7, %v5244_v35  ;;  %v2103_v45 = vrot.slane %v2088_v0, %v5244_v35 }
 0x245   :  { %6446 = vst [vmem:[#allocation8_spill] sm:$0xff] %v5908_v28  ;;  %v5917_v8 = vpop.eup %4991  ;;  %v2847_v22 = vcombine.low %v5901_v20, %v5908_v28  ;;  %v2050_v58 = vcombine.low %v2035_v27, %v2042_v9  ;;  %4896 = vmatpush3.bf16.msra.mxu0 %v4895_v47  ;;  %v2854_v27 = vrot.slane %v2846_v15, %v5244_v35  ;;  %v5949_v15 = vld [vmem:[%s6425_s9 + $0x40] sm:$0xff]  ;;  %5003 = vrcp.f32 %v3023_v54 }
 0x246   :  { %6447 = vst [vmem:[#allocation9_spill] sm:$0xff] %v5917_v8  ;;  %v2868_v32 = vrot.slane %v5917_v8, %v5244_v35  ;;  %v2089_v56 = vcombine.low %v2074_v59, %v2081_v43  ;;  %4897 = vmatprep.subr.bf16.mxu0 %v6431_v12  ;;  %v5954_v59 = vld [vmem:[%s6425_s9 + $0x48] sm:$0xff]  ;;  %v4901_v26 = vpack.c.bf16 %v3479_v24, %v3478_v40  ;;  %v6452_v24 = vmov 0.0|0.0  }
 0x247   :  { %v5940_v1 = vpop.eup %4993  ;;  %v2861_v9 = vrot.slane %v2847_v22, %v5244_v35  ;;  %v2057_v47 = vrot.slane %v2050_v58, %v5244_v35  ;;  %v4904_v7 = vpack.c.bf16 %v5933_v38, %v5928_v13  ;;  %v3089_v12 = vrot.slane %v5750_v14, %v5244_v35 }
 0x248   :  { %6448 = vst [vmem:[#allocation10_spill] sm:$0xff] %v5940_v1  ;;  %v5956_v43 = vpop.eup %4995  ;;  %v2096_v22 = vrot.slane %v2089_v56, %v5244_v35  ;;  %v2883_v56 = vrot.slane %v2868_v32, %v5244_v35  ;;  %v4907_v54 = vpack.c.bf16 %v5954_v59, %v5949_v15  ;;  %v3082_v13 = vcombine.high %v5750_v14, %v5750_v14  ;;  %v5990_v14 = vld [vmem:[%s6425_s9 + $0x58] sm:$0xff] }
 0x249   :  { %6449 = vst [vmem:[#allocation11_spill] sm:$0xff] %v5956_v43  ;;  %v5961_v0 = vpop.eup %4997  ;;  %v2869_v58 = vcombine.low %v2854_v27, %v2861_v9  ;;  %v2885_v60 = vcombine.low %v5940_v1, %v5956_v43  ;;  %v2065_v18 = vcombine.low %v2057_v47, %v2064_v2  ;;  %4899 = vmatpush3.bf16.msra.mxu0 %v4898_v6 }
 0x24a   :  { %6450 = vst [vmem:[#allocation12_spill] sm:$0xff] %v5961_v0  ;;  %v5967_v8 = vpop.eup %4999  ;;  %v2104_v40 = vcombine.low %v2096_v22, %v2103_v45  ;;  %4900 = vmatprep.subr.bf16.mxu0 %v6452_v24  ;;  %v5985_v45 = vld [vmem:[%s6425_s9 + $0x50] sm:$0xff]  ;;  %v3097_v59 = vcombine.high %v3089_v12, %v3089_v12 }
 0x24b   :  { %6451 = vst [vmem:[#allocation13_spill] sm:$0xff] %v5967_v8  ;;  %v5975_v38 = vpop.eup %5001  ;;  %v2876_v2 = vrot.slane %v2869_v58, %v5244_v35  ;;  %v2886_v6 = vcombine.low %v5961_v0, %v5967_v8  ;;  %v2893_v27 = vrot.slane %v2885_v60, %v5244_v35  ;;  %v2156_v32 = vsel %vm2113_vm3, %v2065_v18, -inf  ;;  %v5998_v18 = vld [vmem:[%s6425_s9 + $0x60] sm:$0xff]  ;;  %v6003_v60 = vld [vmem:[%s6425_s9 + $0x68] sm:$0xff] }
 0x24c   :  { %6453 = vst [vmem:[#allocation14_spill] sm:$0xff] %v5975_v38  ;;  %v2907_v9 = vrot.slane %v5975_v38, %v5244_v35  ;;  %v2157_v47 = vrot.slane %v2156_v32, 4  ;;  %v2163_v15 = vsel %vm2113_vm3, %v2104_v40, -inf  ;;  %v6009_v40 = vld [vmem:[%s6425_s9 + $0x70] sm:$0xff]  ;;  %v6014_v38 = vld [vmem:[%s6425_s9 + $0x78] sm:$0xff]  ;;  %v3104_v0 = vrot.slane %v3089_v12, %v5244_v35  ;;  %s4622_s9 = sshll.u32 %s5066_s27, 4  ;;  %s4623_s9 = int_to_ptr.vmem [resolvable:$true] %s4622_s9 }
 0x24d   :  { %v2884_v22 = vcombine.low %v2876_v2, %v2883_v56  ;;  %v2900_v58 = vrot.slane %v2886_v6, %v5244_v35  ;;  %v2164_v8 = vrot.slane %v2163_v15, 4  ;;  %4902 = vmatpush3.bf16.msra.mxu0 %v4901_v26  ;;  %v4910_v56 = vpack.c.bf16 %v5990_v14, %v5985_v45  ;;  %s5038_s28 = scalar_lea.vmem %s4623_s9, 128  ;;  %p5043_p1 = scmp.lt.s32.totalorder %s4623_s9, %s4623_s9 }
 0x24e   :  { %v2158_v43 = vmax.f32 %v2156_v32, %v2157_v47  ;;  %4903 = vmatprep.subr.bf16.mxu0 %v6452_v24  ;;  %v3096_v26 = vrot.slane %v3082_v13, %v5244_v35  ;;  %v3118_v2 = vrot.slane %v3097_v59, %v5244_v35  ;;  %v4913_v20 = vpack.c.bf16 %v6003_v60, %v5998_v18  ;;  %p5039_p0 = scmp.ne.s32.totalorder %s4623_s9, %s5038_s28  ;;  %p5044_p2 = scmp.lt.s32.totalorder %s5038_s28, %s5038_s28 }
 0x24f   :  { %v2908_v6 = vcombine.low %v2893_v27, %v2900_v58  ;;  %v3038_v1 = vsel %vm2113_vm3, %v2884_v22, 0.0  ;;  %v2165_v28 = vmax.f32 %v2163_v15, %v2164_v8  ;;  %v2922_v45 = vrot.slane %v2907_v9, %v5244_v35  ;;  %v6029_v27 = vpop.eup %5003 }
 0x250   :  { %v3039_v49 = vrot.slane %v3038_v1, 4  ;;  %v2159_v33 = vrot.slane %v2158_v43, 2  ;;  %v3120_v32 = vcombine.high %v3118_v2, %v3118_v2  ;;  %v3119_v14 = vcombine.high %v3104_v0, %v3104_v0  ;;  %p5045_p3 = por %p5044_p2, %p5043_p1 }
 0x251   :  { %v2915_v47 = vrot.slane %v2908_v6, %v5244_v35  ;;  %v2166_v13 = vrot.slane %v2165_v28, 2  ;;  %4905 = vmatpush3.bf16.msra.mxu0 %v4904_v7  ;;  %v3111_v15 = vrot.slane %v3096_v26, %v5244_v35  ;;  %v6036_v22 = vmul.f32 %v5608_v42, %v3118_v2 }
 0x252   :  { %v6031_v59 = vadd.f32 %v3039_v49, %v3038_v1  ;;  %v2160_v8 = vmax.f32 %v2158_v43, %v2159_v33  ;;  %4906 = vmatprep.subr.bf16.mxu0 %v6452_v24  ;;  %v3128_v6 = vrot.slane %v6029_v27, %v5244_v35  ;;  %v6454_v7 = vrot.slane %v5879_v11, 2  ;;  %p5046_p4 = pnand %p5045_p3, %p5039_p0 }
 0x253   :  { %v2167_v58 = vmax.f32 %v2165_v28, %v2166_v13  ;;  %v6455_v49 = vrot.slane %v5885_v63, 2  ;;  %v2923_v1 = vcombine.low %v2915_v47, %v2922_v45  ;;  %v3434_v26 = vmul.f32 %v5594_v46, %v3104_v0 }
 0x254   :  { %v6043_v9 = vadd.f32 %v6454_v7, %v5879_v11  ;;  %v2161_v43 = vrot.slane %v2160_v8, 1  ;;  %v6052_v42 = vmul.f32 %v5620_v55, %v3120_v32  ;;  %v3136_v2 = vcombine.high %v3128_v6, %v3128_v6 }
 0x255   :  { %v6048_v33 = vadd.f32 %v6455_v49, %v5885_v63  ;;  %v2168_v28 = vrot.slane %v2167_v58, 1  ;;  %4908 = vmatpush3.bf16.msra.mxu0 %v4907_v54  ;;  %v3143_v13 = vrot.slane %v3128_v6, %v5244_v35  ;;  %v6056_v11 = vmul.f32 %v5614_v30, %v3119_v14 }
 0x256   :  { %v3041_v7 = vrot.slane %v6031_v59, 2  ;;  %v2162_v12 = vmax.f32 %v2160_v8, %v2161_v43  ;;  %4909 = vmatprep.subr.bf16.mxu0 %v6452_v24  ;;  %v3438_v63 = vmul.f32 %v5630_v41, %v3111_v15  ;;  %v3530_v46 = vcombine.low %v3434_v26, %v6036_v22 }
 0x257   :  { %v2169_v0 = vmax.f32 %v2167_v58, %v2168_v28  ;;  %v6063_v55 = vrot.slane %v3136_v2, %v5244_v35  ;;  %v3158_v54 = vcombine.high %v3143_v13, %v3143_v13  ;;  %v3439_v32 = vmul.f32 %v5734_v44, %v3143_v13 }
 0x258   :  { %v3045_v47 = vsel %vm2113_vm3, %v2923_v1, 0.0  ;;  %v2412_v30 = vcombine.high %v2162_v12, %v2162_v12  ;;  %v2419_v45 = vrot.slane %v2162_v12, %v5244_v35  ;;  %v3531_v14 = vcombine.low %v6056_v11, %v6052_v42 }
 0x259   :  { %v2451_v8 = vcombine.high %v2169_v0, %v2169_v0  ;;  %v2458_v41 = vrot.slane %v2169_v0, %v5244_v35  ;;  %4911 = vmatpush3.bf16.msra.mxu0 %v4910_v56  ;;  %v3440_v15 = vmul.f32 %v5738_v51, %v6063_v55  ;;  %v3441_v22 = vmul.f32 %v5744_v19, %v3158_v54 }
 0x25a   :  { %v2426_v58 = vrot.slane %v2412_v30, %v5244_v35  ;;  %v2427_v44 = vcombine.high %v2419_v45, %v2419_v45  ;;  %v2434_v6 = vrot.slane %v2419_v45, %v5244_v35  ;;  %4912 = vmatprep.subr.bf16.mxu0 %v6452_v24  ;;  %v3532_v12 = vcombine.low %v3438_v63, %v3439_v32 }
 0x25b   :  { %v2465_v49 = vrot.slane %v2451_v8, %v5244_v35  ;;  %v2466_v1 = vcombine.high %v2458_v41, %v2458_v41  ;;  %v2473_v43 = vrot.slane %v2458_v41, %v5244_v35  ;;  %v3533_v26 = vcombine.low %v3440_v15, %v3441_v22 }
 0x25c   :  { %v2441_v56 = vrot.slane %v2426_v58, %v5244_v35  ;;  %v2448_v51 = vrot.slane %v2427_v44, %v5244_v35  ;;  %v2449_v42 = vcombine.high %v2434_v6, %v2434_v6  ;;  %v6456_v19 = vcombine.high %v5665_v61, %v5665_v61 }
 0x25d   :  { %v3046_v2 = vrot.slane %v3045_v47, 4  ;;  %v2480_v13 = vrot.slane %v2465_v49, %v5244_v35  ;;  %v2487_v11 = vrot.slane %v2466_v1, %v5244_v35  ;;  %v2488_v63 = vcombine.high %v2473_v43, %v2473_v43  ;;  %4914 = vmatpush3.bf16.msra.mxu0 %v4913_v20 }
 0x25e   :  { %v2560_v28 = vsub.f32 %v6456_v19, %v2434_v6  ;;  %v2450_v0 = vcombine.high %v2448_v51, %v2448_v51  ;;  %v6457_v54 = vcombine.high %v5669_v17, %v5669_v17  ;;  %v2562_v30 = vsub.f32 %v5841_v25, %v2449_v42  ;;  %4915 = vmatprep.subr.bf16.mxu0 %v6452_v24 }
 0x25f   :  { %v2564_v61 = vsub.f32 %v5859_v57, %v2441_v56  ;;  %v2489_v45 = vcombine.high %v2487_v11, %v2487_v11  ;;  %v2565_v8 = vsub.f32 %v5867_v23, %v2473_v43  ;;  %v2566_v41 = vsub.f32 %v5844_v31, %v2487_v11 }
 0x260   :  { %v2561_v32 = vsub.f32 %v6457_v54, %v2448_v51  ;;  %v2567_v15 = vsub.f32 %v5853_v37, %v2488_v63  ;;  %v2563_v20 = vsub.f32 %v5847_v34, %v2450_v0  ;;  %v2630_v18 = vmul.f32 1.442695, %v2560_v28 }
 0x261   :  { %v2634_v22 = vmul.f32 1.442695, %v2562_v30  ;;  %v3047_v17 = vadd.f32 %v3046_v2, %v3045_v47  ;;  %v2569_v58 = vsub.f32 %v5871_v29, %v2480_v13  ;;  %v6458_v25 = vpack.c.bf16 %v6014_v38, %v6009_v40 }
 0x262   :  { %v2632_v60 = vmul.f32 1.442695, %v2561_v32  ;;  %v3540_v57 = vrot.slane %v3530_v46, %v5244_v35  ;;  %v3029_v23 = vrot.slane %v6043_v9, 1  ;;  %v2568_v31 = vsub.f32 %v5863_v62, %v2489_v45 }
 0x263   :  { %4917 = vmatpush3.bf16.msra.mxu0 %v6458_v25  ;;  %5005 = vpow2.f32 %v2630_v18  ;;  %v2636_v37 = vmul.f32 1.442695, %v2563_v20  ;;  %v2638_v44 = vmul.f32 1.442695, %v2564_v61  ;;  %v2640_v34 = vmul.f32 1.442695, %v2565_v8 }
 0x264   :  { %5007 = vpow2.f32 %v2632_v60  ;;  %v2642_v6 = vmul.f32 1.442695, %v2566_v41  ;;  %v3547_v47 = vrot.slane %v3531_v14, %v5244_v35  ;;  %v2644_v29 = vmul.f32 1.442695, %v2567_v15 }
 0x265   :  { %5009 = vpow2.f32 %v2634_v22  ;;  %v3554_v49 = vrot.slane %v3532_v12, %v5244_v35  ;;  %v3561_v38 = vrot.slane %v3533_v26, %v5244_v35  ;;  %v3036_v46 = vrot.slane %v6048_v33, 1 }
 0x266   :  { %5011 = vpow2.f32 %v2636_v37  ;;  %v3562_v40 = vcombine.low %v3540_v57, %v3547_v47  ;;  %v3121_v62 = vcombine.high %v6029_v27, %v6029_v27  ;;  %v3042_v1 = vadd.f32 %v3041_v7, %v6031_v59 }
 0x267   :  { %5013 = vpow2.f32 %v2638_v44  ;;  %v2646_v43 = vmul.f32 1.442695, %v2568_v31  ;;  %v3563_v14 = vcombine.low %v3554_v49, %v3561_v38  ;;  %v2648_v56 = vmul.f32 1.442695, %v2569_v58 }
 0x268   :  { %5015 = vpow2.f32 %v2640_v34  ;;  %v3030_v12 = vadd.f32 %v3029_v23, %v6043_v9  ;;  %v3135_v26 = vrot.slane %v3121_v62, %v5244_v35  ;;  %v3570_v51 = vrot.slane %v3562_v40, %v5244_v35 }
 0x269   :  { %5017 = vpow2.f32 %v2642_v6  ;;  %v3577_v42 = vrot.slane %v3563_v14, %v5244_v35  ;;  %v3048_v19 = vrot.slane %v3047_v17, 2  ;;  %v3037_v27 = vadd.f32 %v3036_v46, %v6048_v33 }
 0x26a   :  { %5019 = vpow2.f32 %v2644_v29  ;;  %v3159_v59 = vcombine.high %v6063_v55, %v6063_v55  ;;  %v3043_v2 = vrot.slane %v3042_v1, 1  ;;  %v3150_v9 = vrot.slane %v3135_v26, %v5244_v35 }
 0x26b   :  { %5021 = vpow2.f32 %v2646_v43  ;;  %v3578_v7 = vcombine.low %v3570_v51, %v3577_v42  ;;  %v3049_v28 = vadd.f32 %v3048_v19, %v3047_v17  ;;  %v6459_v63 = vmov 0.0  }
 0x26c   :  { %5023 = vpow2.f32 %v2648_v56  ;;  %v3442_v33 = vmul.f32 %v5753_v53, %v3159_v59  ;;  %v3443_v30 = vmul.f32 %v5757_v10, %v3150_v9  ;;  %v3044_v61 = vadd.f32 %v3043_v2, %v3042_v1 }
 0x26d   :  { %v6123_v13 = vpop.eup %5005  ;;  %4835 = vmatmul.mubr.f32.vlgmr.msra.gmra.mrb[12].mxu0 %v3578_v7  ;;  %5025 = vrcp.f32 %v3030_v12  ;;  %v3050_v54 = vrot.slane %v3049_v28, 1 }
 0x26e   :  { %v6125_v11 = vpop.eup %5007  ;;  %4837 = vmatprep.mubr.msk.f32.mxu0 %vm5063_vm1, %v6459_v63  ;;  %5027 = vrcp.f32 %v3037_v27  ;;  %v3579_v15 = vcombine.low %v3442_v33, %v3443_v30 }
 0x26f   :  { %v6130_v55 = vpop.eup %5009  ;;  %v2924_v0 = vcombine.low %v6123_v13, %v6125_v11  ;;  %v3051_v22 = vadd.f32 %v3050_v54, %v3049_v28  ;;  %5029 = vrcp.f32 %v3044_v61 }
 0x270   :  { %v6134_v32 = vpop.eup %5011  ;;  %v6160_v31 = vrot.slane %v3579_v15, %v5244_v35 }
 0x271   :  { %v6137_v45 = vpop.eup %5013  ;;  %v2925_v8 = vcombine.low %v6130_v55, %v6134_v32  ;;  %v2932_v20 = vrot.slane %v2924_v0, %v5244_v35  ;;  %5031 = vrcp.f32 %v3051_v22 }
 0x272   :  { %v6141_v41 = vpop.eup %5015  ;;  %v2946_v60 = vrot.slane %v6137_v45, %v5244_v35 }
 0x273   :  { %v6143_v53 = vpop.eup %5017  ;;  %v2939_v18 = vrot.slane %v2925_v8, %v5244_v35 }
 0x274   :  { %v6149_v10 = vpop.eup %5019  ;;  %v2963_v17 = vcombine.low %v6141_v41, %v6143_v53  ;;  %v2961_v34 = vrot.slane %v2946_v60, %v5244_v35 }
 0x275   :  { %v6153_v58 = vpop.eup %5021  ;;  %v2947_v25 = vcombine.low %v2932_v20, %v2939_v18 }
 0x276   :  { %v6155_v57 = vpop.eup %5023  ;;  %v2964_v23 = vcombine.low %v6149_v10, %v6153_v58  ;;  %v2971_v29 = vrot.slane %v2963_v17, %v5244_v35 }
 0x277   :  { %v5026_v37 = vpop.eup %5025  ;;  %v2954_v44 = vrot.slane %v2947_v25, %v5244_v35  ;;  %v2985_v6 = vrot.slane %v6155_v57, %v5244_v35 }
 0x278   :  { %v5028_v47 = vpop.eup %5027  ;;  %v2978_v49 = vrot.slane %v2964_v23, %v5244_v35  ;;  %v3160_v38 = vcombine.high %v5026_v37, %v5026_v37  ;;  %v3167_v40 = vrot.slane %v5026_v37, %v5244_v35 }
 0x279   :  { %v2962_v46 = vcombine.low %v2954_v44, %v2961_v34  ;;  %v3000_v62 = vrot.slane %v2985_v6, %v5244_v35  ;;  %v3206_v1 = vrot.slane %v5028_v47, %v5244_v35  ;;  %v3199_v43 = vcombine.high %v5028_v47, %v5028_v47  ;;  %v5030_v30 = vpop.eup %5029 }
 0x27a   :  { %v2986_v14 = vcombine.low %v2971_v29, %v2978_v49  ;;  %v3174_v56 = vrot.slane %v3160_v38, %v5244_v35  ;;  %v3175_v12 = vcombine.high %v3167_v40, %v3167_v40  ;;  %v3182_v26 = vrot.slane %v3167_v40, %v5244_v35 }
 0x27b   :  { %v3052_v51 = vsel %vm2113_vm3, %v2962_v46, 0.0  ;;  %v3221_v42 = vrot.slane %v3206_v1, %v5244_v35  ;;  %v3213_v19 = vrot.slane %v3199_v43, %v5244_v35  ;;  %v3214_v27 = vcombine.high %v3206_v1, %v3206_v1  ;;  %v5032_v37 = vpop.eup %5031 }
 0x27c   :  { %v2993_v59 = vrot.slane %v2986_v14, %v5244_v35  ;;  %v3053_v7 = vrot.slane %v3052_v51, 4  ;;  %v3189_v28 = vrot.slane %v3174_v56, %v5244_v35  ;;  %v3196_v2 = vrot.slane %v3175_v12, %v5244_v35 }
 0x27d   :  { %v3197_v9 = vcombine.high %v3182_v26, %v3182_v26  ;;  %v3444_v33 = vmul.f32 %v5761_v16, %v3182_v26  ;;  %v3449_v0 = vmul.f32 %v5796_v3, %v3221_v42  ;;  %v3228_v54 = vrot.slane %v3213_v19, %v5244_v35 }
 0x27e   :  { %v3001_v61 = vcombine.low %v2993_v59, %v3000_v62  ;;  %v3054_v8 = vadd.f32 %v3053_v7, %v3052_v51  ;;  %v3198_v15 = vcombine.high %v3196_v2, %v3196_v2  ;;  %v3445_v20 = vmul.f32 %v5765_v4, %v3196_v2  ;;  %v6461_v7 = vld [vmem:[#allocation6_spill] sm:$0xff] }
 0x27f   :  { %v3446_v18 = vmul.f32 %v5769_v36, %v3197_v9  ;;  %v3448_v60 = vmul.f32 %v5777_v5, %v3189_v28  ;;  %v3235_v22 = vrot.slane %v3214_v27, %v5244_v35  ;;  %v3236_v17 = vcombine.high %v3221_v42, %v3221_v42 }
 0x280   :  { %v3055_v25 = vrot.slane %v3054_v8, 2  ;;  %v3059_v16 = vsel %vm2113_vm3, %v3001_v61, 0.0  ;;  %v3447_v3 = vmul.f32 %v5774_v48, %v3198_v15  ;;  %v3580_v23 = vcombine.low %v3444_v33, %v3445_v20 }
 0x281   :  { %v3060_v44 = vrot.slane %v3059_v16, 4  ;;  %v3582_v34 = vcombine.low %v3448_v60, %v3449_v0  ;;  %v3237_v6 = vcombine.high %v3235_v22, %v3235_v22  ;;  %v3245_v47 = vrot.slane %v5030_v30, %v5244_v35 }
 0x282   :  { %v3056_v4 = vadd.f32 %v3055_v25, %v3054_v8  ;;  %v3581_v29 = vcombine.low %v3446_v18, %v3447_v3  ;;  %v3596_v36 = vrot.slane %v3580_v23, %v5244_v35  ;;  %v3450_v5 = vmul.f32 %v5802_v21, %v3235_v22  ;;  %v6460_v21 = vld [vmem:[#allocation5_spill] sm:$0xff] }
 0x283   :  { %v3061_v49 = vadd.f32 %v3060_v44, %v3059_v16  ;;  %v3610_v38 = vrot.slane %v3582_v34, %v5244_v35  ;;  %v3253_v40 = vcombine.high %v3245_v47, %v3245_v47  ;;  %v3260_v46 = vrot.slane %v3245_v47, %v5244_v35  ;;  %v6464_v47 = vld [vmem:[#allocation9_spill] sm:$0xff] }
 0x284   :  { %v3603_v48 = vrot.slane %v3581_v29, %v5244_v35  ;;  %v3611_v62 = vcombine.low %v6160_v31, %v3596_v36  ;;  %v3451_v1 = vmul.f32 %v5806_v39, %v3236_v17  ;;  %v3452_v43 = vmul.f32 %v5816_v50, %v3237_v6  ;;  %v6462_v31 = vld [vmem:[#allocation7_spill] sm:$0xff]  ;;  %v6465_v29 = vld [vmem:[#allocation10_spill] sm:$0xff] }
 0x285   :  { %v3274_v14 = vrot.slane %v3253_v40, %v5244_v35  ;;  %v3275_v56 = vcombine.high %v3260_v46, %v3260_v46  ;;  %v3453_v12 = vmul.f32 %v5819_v52, %v3228_v54  ;;  %v3454_v26 = vmul.f32 %v6460_v21, %v3260_v46  ;;  %v6463_v52 = vld [vmem:[#allocation8_spill] sm:$0xff]  ;;  %v6466_v46 = vld [vmem:[#allocation11_spill] sm:$0xff] }
 0x286   :  { %v3612_v51 = vcombine.low %v3603_v48, %v3610_v38  ;;  %v3619_v42 = vrot.slane %v3611_v62, %v5244_v35  ;;  %v3628_v19 = vcombine.low %v3450_v5, %v3451_v1  ;;  %v3057_v27 = vrot.slane %v3056_v4, 1  ;;  %v6467_v62 = vld [vmem:[#allocation12_spill] sm:$0xff] }
 0x287   :  { %v3276_v59 = vcombine.high %v3274_v14, %v3274_v14  ;;  %v3455_v28 = vmul.f32 %v6461_v7, %v3274_v14  ;;  %v3456_v2 = vmul.f32 %v6462_v31, %v3275_v56  ;;  %v3629_v39 = vcombine.low %v3452_v43, %v3453_v12 }
 0x288   :  { %v3626_v50 = vrot.slane %v3612_v51, %v5244_v35  ;;  %v3638_v9 = vrot.slane %v3628_v19, %v5244_v35  ;;  %v3058_v33 = vadd.f32 %v3057_v27, %v3056_v4  ;;  %v3238_v0 = vcombine.high %v5030_v30, %v5030_v30  ;;  %v6468_v27 = vld [vmem:[#allocation13_spill] sm:$0xff] }
 0x289   :  { %v3457_v54 = vmul.f32 %v6463_v52, %v3276_v59  ;;  %v3630_v61 = vcombine.low %v3454_v26, %v3455_v28  ;;  %v3645_v8 = vrot.slane %v3629_v39, %v5244_v35  ;;  %v3277_v15 = vcombine.high %v5032_v37, %v5032_v37 }
 0x28a   :  { %v3627_v20 = vcombine.low %v3619_v42, %v3626_v50  ;;  %5033 = vrcp.f32 %v3058_v33  ;;  %v3252_v18 = vrot.slane %v3238_v0, %v5244_v35  ;;  %v3284_v60 = vrot.slane %v5032_v37, %v5244_v35 }
 0x28b   :  { %v3631_v22 = vcombine.low %v3456_v2, %v3457_v54  ;;  %v3660_v17 = vcombine.low %v3638_v9, %v3645_v8  ;;  %v3062_v3 = vrot.slane %v3061_v49, 2  ;;  %v3652_v23 = vrot.slane %v3630_v61, %v5244_v35  ;;  %v6469_v2 = vld [vmem:[#allocation14_spill] sm:$0xff] }
 0x28c   :  { %4838 = vmatmul.mubr.f32.gmra.mrb[14].mxu0 %v3627_v20  ;;  %v3267_v25 = vrot.slane %v3252_v18, %v5244_v35  ;;  %v3292_v16 = vcombine.high %v3284_v60, %v3284_v60  ;;  %v3299_v30 = vrot.slane %v3284_v60, %v5244_v35  ;;  %v3291_v34 = vrot.slane %v3277_v15, %v5244_v35 }
 0x28d   :  { %4840 = vmatprep.mubr.msk.f32.mxu0 %vm5063_vm1, %v6459_v63  ;;  %v3659_v44 = vrot.slane %v3631_v22, %v5244_v35  ;;  %v3063_v38 = vadd.f32 %v3062_v3, %v3061_v49  ;;  %v3668_v14 = vrot.slane %v3660_v17, %v5244_v35 }
 0x28e   :  { %v3313_v37 = vrot.slane %v3292_v16, %v5244_v35  ;;  %v3314_v6 = vcombine.high %v3299_v30, %v3299_v30  ;;  %v3458_v4 = vmul.f32 %v6464_v47, %v3267_v25  ;;  %v3459_v36 = vmul.f32 %v6465_v29, %v3299_v30 }
 0x28f   :  { %v3661_v5 = vcombine.low %v3652_v23, %v3659_v44  ;;  %v3064_v12 = vrot.slane %v3063_v38, 1  ;;  %v3306_v21 = vrot.slane %v3291_v34, %v5244_v35 }
 0x290   :  { %v3315_v40 = vcombine.high %v3313_v37, %v3313_v37  ;;  %v3460_v48 = vmul.f32 %v6466_v46, %v3313_v37  ;;  %v3461_v1 = vmul.f32 %v6467_v62, %v3314_v6  ;;  %v3677_v43 = vcombine.low %v3458_v4, %v3459_v36 }
 0x291   :  { %v3675_v56 = vrot.slane %v3661_v5, %v5244_v35  ;;  %v3065_v42 = vadd.f32 %v3064_v12, %v3063_v38  ;;  %v3463_v39 = vmul.f32 %v6469_v2, %v3306_v21  ;;  %v4503_v2 = vld [vmem:[%s6426_s10 + $0x8] sm:$0xff] }
 0x292   :  { %v3678_v26 = vcombine.low %v3460_v48, %v3461_v1  ;;  %v3462_v59 = vmul.f32 %v6468_v27, %v3315_v40  ;;  %v3687_v49 = vrot.slane %v3677_v43, %v5244_v35 }
 0x293   :  { %v3676_v51 = vcombine.low %v3668_v14, %v3675_v56  ;;  %5035 = vrcp.f32 %v3065_v42 }
 0x294   :  { %v5034_v19 = vpop.eup %5033  ;;  %v3694_v7 = vrot.slane %v3678_v26, %v5244_v35  ;;  %v3679_v52 = vcombine.low %v3462_v59, %v3463_v39 }
 0x295   :  { %4841 = vmatmul.mubr.f32.gmra.mrb[16].mxu0 %v3676_v51  ;;  %v3323_v28 = vrot.slane %v5034_v19, %v5244_v35  ;;  %v3316_v31 = vcombine.high %v5034_v19, %v5034_v19 }
 0x296   :  { %4843 = vmatprep.mubr.msk.f32.mxu0 %vm5063_vm1, %v6459_v63  ;;  %v3709_v50 = vcombine.low %v3687_v49, %v3694_v7  ;;  %v3701_v25 = vrot.slane %v3679_v52, %v5244_v35  ;;  %v4507_v52 = vld [vmem:[%s6426_s10 + $0x28] sm:$0xff] }
 0x297   :  { %v3331_v9 = vcombine.high %v3323_v28, %v3323_v28  ;;  %v3338_v33 = vrot.slane %v3323_v28, %v5244_v35  ;;  %v3330_v0 = vrot.slane %v3316_v31, %v5244_v35  ;;  %v4502_v31 = vld [vmem:[%s6426_s10] sm:$0xff] }
 0x298   :  { %v4919_v39 = vpack.c.bf16 %v4503_v2, %v4502_v31 }
 0x299   :  { %v3352_v54 = vrot.slane %v3331_v9, %v5244_v35  ;;  %v3464_v61 = vmul.f32 %v6123_v13, %v3338_v33  ;;  %v3345_v8 = vrot.slane %v3330_v0, %v5244_v35  ;;  %v3353_v15 = vcombine.high %v3338_v33, %v3338_v33  ;;  %v4505_v9 = vld [vmem:[%s6426_s10 + $0x18] sm:$0xff]  ;;  %v4506_v0 = vld [vmem:[%s6426_s10 + $0x20] sm:$0xff] }
 0x29a   :  { %4920 = vmatpush3.bf16.msra.mxu1 %v4919_v39 }
 0x29b   :  { %v3465_v20 = vmul.f32 %v6125_v11, %v3352_v54  ;;  %v3354_v18 = vcombine.high %v3352_v54, %v3352_v54  ;;  %v3466_v60 = vmul.f32 %v6130_v55, %v3353_v15  ;;  %v3468_v22 = vmul.f32 %v6137_v45, %v3345_v8  ;;  %4921 = vmatprep.subr.bf16.mxu1 %v6452_v24  ;;  %v4509_v8 = vld [vmem:[%s6426_s10 + $0x38] sm:$0xff] }
 0x29c   :  { %v3717_v45 = vrot.slane %v3709_v50, %v5244_v35  ;;  %v4504_v50 = vld [vmem:[%s6426_s10 + $0x10] sm:$0xff]  ;;  %v4925_v54 = vpack.c.bf16 %v4507_v52, %v4506_v0 }
 0x29d   :  { %v3680_v17 = vcombine.low %v3464_v61, %v3465_v20  ;;  %v3467_v16 = vmul.f32 %v6134_v32, %v3354_v18  ;;  %v5036_v30 = vpop.eup %5035  ;;  %v4922_v33 = vpack.c.bf16 %v4505_v9, %v4504_v50  ;;  %v4508_v61 = vld [vmem:[%s6426_s10 + $0x30] sm:$0xff]  ;;  %v4510_v20 = vld [vmem:[%s6426_s10 + $0x40] sm:$0xff]  ;;  %v4511_v18 = vld [vmem:[%s6426_s10 + $0x48] sm:$0xff] }
 0x29e   :  { %v3355_v13 = vcombine.high %v5036_v30, %v5036_v30  ;;  %v3362_v44 = vrot.slane %v5036_v30, %v5244_v35  ;;  %v4928_v15 = vpack.c.bf16 %v4509_v8, %v4508_v61 }
 0x29f   :  { %v3708_v3 = vrot.slane %v3680_v17, %v5244_v35  ;;  %v3726_v23 = vcombine.low %v3466_v60, %v3467_v16  ;;  %4923 = vmatpush3.bf16.msra.mxu1 %v4922_v33  ;;  %v4931_v60 = vpack.c.bf16 %v4511_v18, %v4510_v20  ;;  %v4513_v17 = vld [vmem:[%s6426_s10 + $0x58] sm:$0xff]  ;;  %v6312_v16 = vld [vmem:[%s6423_s7] ss:$0 sm:$0xff] }
 0x2a0   :  { %v3369_v11 = vrot.slane %v3355_v13, %v5244_v35  ;;  %v3370_v37 = vcombine.high %v3362_v44, %v3362_v44  ;;  %v3377_v55 = vrot.slane %v3362_v44, %v5244_v35  ;;  %4924 = vmatprep.subr.bf16.mxu1 %v6452_v24 }
 0x2a1   :  { %v3710_v34 = vcombine.low %v3701_v25, %v3708_v3  ;;  %v3736_v48 = vrot.slane %v3726_v23, %v5244_v35 }
 0x2a2   :  { %v3384_v47 = vrot.slane %v3369_v11, %v5244_v35  ;;  %v3391_v32 = vrot.slane %v3370_v37, %v5244_v35  ;;  %v3392_v4 = vcombine.high %v3377_v55, %v3377_v55  ;;  %v3469_v29 = vmul.f32 %v6141_v41, %v3377_v55 }
 0x2a3   :  { %v3724_v6 = vrot.slane %v3710_v34, %v5244_v35  ;;  %4926 = vmatpush3.bf16.msra.mxu1 %v4925_v54 }
 0x2a4   :  { %v3393_v5 = vcombine.high %v3391_v32, %v3391_v32  ;;  %v3470_v38 = vmul.f32 %v6143_v53, %v3391_v32  ;;  %v3471_v40 = vmul.f32 %v6149_v10, %v3392_v4  ;;  %v3727_v46 = vcombine.low %v3468_v22, %v3469_v29  ;;  %4927 = vmatprep.subr.bf16.mxu1 %v6452_v24  ;;  %v4512_v22 = vld [vmem:[%s6426_s10 + $0x50] sm:$0xff] }
 0x2a5   :  { %v3725_v36 = vcombine.low %v3717_v45, %v3724_v6  ;;  %v3473_v1 = vmul.f32 %v6155_v57, %v3384_v47  ;;  %v4934_v25 = vpack.c.bf16 %v4513_v17, %v4512_v22 }
 0x2a6   :  { %v3472_v62 = vmul.f32 %v6153_v58, %v3393_v5  ;;  %v3728_v43 = vcombine.low %v3470_v38, %v3471_v40  ;;  %v3743_v41 = vrot.slane %v3727_v46, %v5244_v35 }
 0x2a7   :  { %4844 = vmatmul.mubr.f32.gmra.mrb[18].mxu0 %v3725_v36  ;;  %4929 = vmatpush3.bf16.msra.mxu1 %v4928_v15 }
 0x2a8   :  { %4846 = vmatprep.mubr.msk.f32.mxu0 %vm5063_vm1, %v6459_v63  ;;  %v3729_v14 = vcombine.low %v3472_v62, %v3473_v1  ;;  %v3758_v56 = vcombine.low %v3736_v48, %v3743_v41  ;;  %v3750_v53 = vrot.slane %v3728_v43, %v5244_v35  ;;  %4930 = vmatprep.subr.bf16.mxu1 %v6452_v24 }
 0x2aa   :  { %v3757_v10 = vrot.slane %v3729_v14, %v5244_v35  ;;  %v3766_v21 = vrot.slane %v3758_v56, %v5244_v35 }
 0x2ab   :  { %4932 = vmatpush3.bf16.msra.mxu1 %v4931_v60 }
 0x2ac   :  { %v3759_v12 = vcombine.low %v3750_v53, %v3757_v10  ;;  %4933 = vmatprep.subr.bf16.mxu1 %v6452_v24 }
 0x2ae   :  { %v3773_v26 = vrot.slane %v3759_v12, %v5244_v35 }
 0x2af   :  { %4935 = vmatpush3.bf16.msra.mxu1 %v4934_v25 }
 0x2b0   :  { %v3774_v51 = vcombine.low %v3766_v21, %v3773_v26 }
 0x2b2   :  { %4847 = vmatmul.mubr.f32.gmra.mrb[20].mxu0 %v3774_v51 }
 0x2c4   :  { %v317_v63 = vpop.f32.mrb[2].mxu0 }
 0x2c5   :  { %v4750_v58 = vpop.f32.mrb[3].mxu0  ;;  %v318_v30 = vadd.f32 %v6312_v16, %v317_v63 }
 0x2c8   :  { %v322_v42 = vpop.f32.mrb[4].mxu0 }
 0x2c9   :  { %v4753_v57 = vpop.f32.mrb[5].mxu0  ;;  %v323_v46 = vadd.f32 %v6312_v16, %v322_v42 }
 0x2cc   :  { %v6262_v19 = vpop.f32.mrb[6].mxu0 }
 0x2cd   :  { %v4756_v27 = vpop.f32.mrb[7].mxu0 }
 0x2d0   :  { %v6264_v59 = vpop.f32.mrb[8].mxu0 }
 0x2d1   :  { %v4759_v49 = vpop.f32.mrb[9].mxu0 }
 0x2da   :  { %v6266_v7 = vpop.f32.mrb[10].mxu0 }
 0x2db   :  { %v4762_v28 = vpop.f32.mrb[11].mxu0 }
 0x2dc   :  { %v328_v28 = vadd.f32 %v6312_v16, %v6262_v19 }
 0x340   :  { %v3846_v3 = vpop.f32.mrb[12].mxu0 }
 0x341   :  { %v3870_v23 = vmul.f32 %v3846_v3, %v318_v30  ;;  %v4836_v13 = vpop.f32.mrb[13].mxu0 }
 0x343   :  { %v3887_v44 = vrot.slane %v3870_v23, %v5244_v35  ;;  %v3880_v37 = vcombine.high %v3870_v23, %v3870_v23 }
 0x345   :  { %v3895_v34 = vcombine.high %v3887_v44, %v3887_v44  ;;  %v3903_v55 = vrot.slane %v3887_v44, %v5244_v35  ;;  %v3894_v6 = vrot.slane %v3880_v37, %v5244_v35 }
 0x347   :  { %v3917_v11 = vrot.slane %v3895_v34, %v5244_v35  ;;  %v3910_v4 = vrot.slane %v3894_v6, %v5244_v35  ;;  %v3896_v5 = vcombine.high %v3894_v6, %v3894_v6 }
 0x349   :  { %v4125_v24 = vcombine.low %v3903_v55, %v3917_v11  ;;  %v4653_v45 = vcombine.high %v3903_v55, %v3917_v11  ;;  %v4147_v36 = vrot.slane %v3910_v4, %v5244_v35  ;;  %v3924_v48 = vrot.slane %v3896_v5, %v5244_v35 }
 0x34a   :  { %v3926_v1 = vcombine.high %v3910_v4, %v3910_v4 }
 0x34b   :  { %v4133_v47 = vrot.slane %v4125_v24, %v5244_v35  ;;  %v4140_v32 = vrot.slane %v4653_v45, %v5244_v35  ;;  %v4162_v40 = vrot.slane %v4147_v36, %v5244_v35  ;;  %v3928_v53 = vcombine.high %v3924_v48, %v3924_v48 }
 0x34c   :  { %v4164_v21 = vcombine.low %v3924_v48, %v3926_v1 }
 0x34d   :  { %v4148_v29 = vcombine.low %v4133_v47, %v4140_v32 }
 0x34e   :  { %v4172_v31 = vrot.slane %v4164_v21, %v5244_v35 }
 0x34f   :  { %v4155_v38 = vrot.slane %v4148_v29, %v5244_v35 }
 0x351   :  { %v4163_v62 = vcombine.low %v4155_v38, %v4162_v40 }
 0x353   :  { %v4446_v56 = vsel %vm4445_vm4, %v4163_v62, 0.0 }
 0x354   :  { %v4447_v58 = vrot.slane %v4446_v56, 4 }
 0x356   :  { %v4448_v61 = vadd.f32 %v4447_v58, %v4446_v56 }
 0x358   :  { %v4449_v44 = vrot.slane %v4448_v61, 2 }
 0x35a   :  { %v4450_v5 = vadd.f32 %v4449_v44, %v4448_v61 }
 0x35f   :  { %v3851_v43 = vpop.f32.mrb[14].mxu0 }
 0x360   :  { %v3871_v41 = vmul.f32 %v3851_v43, %v323_v46  ;;  %v4839_v14 = vpop.f32.mrb[15].mxu0 }
 0x362   :  { %v3929_v10 = vcombine.high %v3871_v41, %v3871_v41  ;;  %v3936_v12 = vrot.slane %v3871_v41, %v5244_v35 }
 0x364   :  { %v3943_v26 = vrot.slane %v3929_v10, %v5244_v35  ;;  %v3944_v51 = vcombine.high %v3936_v12, %v3936_v12  ;;  %v3952_v63 = vrot.slane %v3936_v12, %v5244_v35  ;;  %v4451_v10 = vrot.slane %v4450_v5, 1 }
 0x366   :  { %v3945_v42 = vcombine.high %v3943_v26, %v3943_v26  ;;  %v3959_v57 = vrot.slane %v3943_v26, %v5244_v35  ;;  %v3966_v27 = vrot.slane %v3944_v51, %v5244_v35  ;;  %v4165_v49 = vcombine.low %v3928_v53, %v3952_v63 }
 0x368   :  { %v3973_v2 = vrot.slane %v3945_v42, %v5244_v35  ;;  %v3975_v39 = vcombine.high %v3959_v57, %v3959_v57  ;;  %v4179_v50 = vrot.slane %v4165_v49, %v5244_v35  ;;  %v4186_v9 = vrot.slane %v3966_v27, %v5244_v35  ;;  %v3856_v33 = vpop.f32.mrb[16].mxu0 }
 0x369   :  { %v4654_v0 = vcombine.high %v3952_v63, %v3966_v27  ;;  %v3872_v52 = vmul.f32 %v3856_v33, %v328_v28  ;;  %v4842_v54 = vpop.f32.mrb[17].mxu0  ;;  %v333_v42 = vadd.f32 %v6312_v16, %v6264_v59  ;;  %v4452_v28 = vadd.f32 %v4451_v10, %v4450_v5 }
 0x36a   :  { %v4187_v8 = vcombine.low %v4172_v31, %v4179_v50  ;;  %v4204_v15 = vcombine.low %v3959_v57, %v3973_v2  ;;  %v4201_v20 = vrot.slane %v4186_v9, %v5244_v35  ;;  %v4225_v19 = vrot.slane %v3975_v39, %v5244_v35 }
 0x36b   :  { %v3978_v18 = vcombine.high %v3872_v52, %v3872_v52  ;;  %v3985_v60 = vrot.slane %v3872_v52, %v5244_v35  ;;  %v4211_v17 = vrot.slane %v4654_v0, %v5244_v35  ;;  %v3977_v30 = vcombine.high %v3973_v2, %v3973_v2 }
 0x36c   :  { %v4194_v22 = vrot.slane %v4187_v8, %v5244_v35  ;;  %v4218_v25 = vrot.slane %v4204_v15, %v5244_v35  ;;  %v4240_v6 = vrot.slane %v4225_v19, %v5244_v35 }
 0x36d   :  { %v3992_v3 = vrot.slane %v3978_v18, %v5244_v35  ;;  %v3993_v23 = vcombine.high %v3985_v60, %v3985_v60  ;;  %v4001_v13 = vrot.slane %v3985_v60, %v5244_v35 }
 0x36e   :  { %v4202_v34 = vcombine.low %v4194_v22, %v4201_v20  ;;  %v4226_v11 = vcombine.low %v4211_v17, %v4218_v25 }
 0x36f   :  { %v3994_v37 = vcombine.high %v3992_v3, %v3992_v3  ;;  %v4015_v55 = vrot.slane %v3993_v23, %v5244_v35  ;;  %v4023_v24 = vcombine.high %v4001_v13, %v4001_v13  ;;  %v4242_v32 = vcombine.low %v3977_v30, %v4001_v13 }
 0x370   :  { %v4233_v45 = vrot.slane %v4226_v11, %v5244_v35  ;;  %v4453_v47 = vsel %vm4445_vm4, %v4202_v34, 0.0  ;;  %v4008_v41 = vrot.slane %v3992_v3, %v5244_v35 }
 0x371   :  { %v4454_v4 = vrot.slane %v4453_v47, 4  ;;  %v4025_v29 = vcombine.high %v4015_v55, %v4015_v55  ;;  %v4243_v36 = vcombine.low %v4015_v55, %v4023_v24  ;;  %v4022_v40 = vrot.slane %v3994_v37, %v5244_v35 }
 0x372   :  { %v4241_v38 = vcombine.low %v4233_v45, %v4240_v6  ;;  %v4250_v46 = vrot.slane %v4242_v32, %v5244_v35 }
 0x373   :  { %v4455_v48 = vadd.f32 %v4454_v4, %v4453_v47  ;;  %v4257_v62 = vrot.slane %v4243_v36, %v5244_v35  ;;  %v4264_v1 = vrot.slane %v4025_v29, %v5244_v35  ;;  %v4281_v12 = vcombine.low %v4008_v41, %v4022_v40 }
 0x374   :  { %v4460_v43 = vsel %vm4445_vm4, %v4241_v38, 0.0  ;;  %v4655_v21 = vcombine.high %v4008_v41, %v4022_v40  ;;  %v338_v4 = vadd.f32 %v6312_v16, %v6266_v7 }
 0x375   :  { %v4456_v14 = vrot.slane %v4455_v48, 2  ;;  %v4461_v56 = vrot.slane %v4460_v43, 4  ;;  %v4265_v53 = vcombine.low %v4250_v46, %v4257_v62  ;;  %v4279_v58 = vrot.slane %v4264_v1, %v5244_v35 }
 0x376   :  { %v4289_v31 = vrot.slane %v4281_v12, %v5244_v35  ;;  %v4296_v2 = vrot.slane %v4655_v21, %v5244_v35 }
 0x377   :  { %v4457_v26 = vadd.f32 %v4456_v14, %v4455_v48  ;;  %v4462_v51 = vadd.f32 %v4461_v56, %v4460_v43  ;;  %v4272_v63 = vrot.slane %v4265_v53, %v5244_v35 }
 0x378   :  { %v4304_v20 = vcombine.low %v4289_v31, %v4296_v2 }
 0x379   :  { %v4458_v57 = vrot.slane %v4457_v26, 1  ;;  %v4463_v27 = vrot.slane %v4462_v51, 2  ;;  %v4280_v49 = vcombine.low %v4272_v63, %v4279_v58 }
 0x37a   :  { %v3861_v39 = vpop.f32.mrb[18].mxu0  ;;  %v4311_v34 = vrot.slane %v4304_v20, %v5244_v35 }
 0x37b   :  { %v4459_v50 = vadd.f32 %v4458_v57, %v4457_v26  ;;  %v4464_v9 = vadd.f32 %v4463_v27, %v4462_v51  ;;  %v4467_v33 = vsel %vm4445_vm4, %v4280_v49, 0.0  ;;  %v3873_v0 = vmul.f32 %v3861_v39, %v333_v42  ;;  %v4845_v52 = vpop.f32.mrb[19].mxu0 }
 0x37c   :  { %v4468_v54 = vrot.slane %v4467_v33, 4 }
 0x37d   :  { %v4465_v61 = vrot.slane %v4464_v9, 1  ;;  %v4027_v8 = vcombine.high %v3873_v0, %v3873_v0  ;;  %v4034_v59 = vrot.slane %v3873_v0, %v5244_v35  ;;  %v4530_v15 = vsel %vm4529_vm5, %v4459_v50, %v4452_v28 }
 0x37e   :  { %v4469_v19 = vadd.f32 %v4468_v54, %v4467_v33 }
 0x37f   :  { %v4466_v18 = vadd.f32 %v4465_v61, %v4464_v9  ;;  %v4041_v60 = vrot.slane %v4027_v8, %v5244_v35  ;;  %v4042_v22 = vcombine.high %v4034_v59, %v4034_v59  ;;  %v4050_v17 = vrot.slane %v4034_v59, %v5244_v35 }
 0x380   :  { %v4470_v25 = vrot.slane %v4469_v19, 2 }
 0x381   :  { %v4043_v30 = vcombine.high %v4041_v60, %v4041_v60  ;;  %v4064_v3 = vrot.slane %v4042_v22, %v5244_v35  ;;  %v4072_v23 = vcombine.high %v4050_v17, %v4050_v17  ;;  %v4303_v44 = vrot.slane %v4050_v17, %v5244_v35 }
 0x382   :  { %v4471_v13 = vadd.f32 %v4470_v25, %v4469_v19  ;;  %v4532_v11 = vsel %vm4531_vm6, %v4466_v18, %v4530_v15  ;;  %v4057_v37 = vrot.slane %v4041_v60, %v5244_v35 }
 0x383   :  { %v4071_v55 = vrot.slane %v4043_v30, %v5244_v35  ;;  %v4074_v24 = vcombine.high %v4064_v3, %v4064_v3  ;;  %v4320_v45 = vcombine.low %v4064_v3, %v4072_v23  ;;  %v4318_v47 = vrot.slane %v4303_v44, %v5244_v35 }
 0x384   :  { %v4472_v6 = vrot.slane %v4471_v13, 1 }
 0x385   :  { %v4321_v32 = vcombine.low %v4074_v24, %v4057_v37  ;;  %v4319_v36 = vcombine.low %v4311_v34, %v4318_v47  ;;  %v4328_v5 = vrot.slane %v4320_v45, %v5244_v35  ;;  %v4342_v40 = vrot.slane %v4071_v55, %v5244_v35  ;;  %v3866_v46 = vpop.f32.mrb[20].mxu0 }
 0x386   :  { %v4473_v29 = vadd.f32 %v4472_v6, %v4471_v13  ;;  %v3874_v62 = vmul.f32 %v3866_v46, %v338_v4  ;;  %v4848_v1 = vpop.f32.mrb[21].mxu0  ;;  %v4656_v27 = vcombine.high %v4057_v37, %v4071_v55 }
 0x387   :  { %v4335_v38 = vrot.slane %v4321_v32, %v5244_v35  ;;  %v4474_v48 = vsel %vm4445_vm4, %v4319_v36, 0.0  ;;  %v4357_v16 = vrot.slane %v4342_v40, %v5244_v35 }
 0x388   :  { %v4534_v43 = vsel %vm4533_vm7, %v4473_v29, %v4532_v11  ;;  %v4475_v14 = vrot.slane %v4474_v48, 4  ;;  %v4076_v56 = vcombine.high %v3874_v62, %v3874_v62  ;;  %v4083_v53 = vrot.slane %v3874_v62, %v5244_v35 }
 0x389   :  { %v4343_v41 = vcombine.low %v4328_v5, %v4335_v38  ;;  %v4367_v59 = vrot.slane %v4656_v27, %v5244_v35 }
 0x38a   :  { %v4476_v10 = vadd.f32 %v4475_v14, %v4474_v48  ;;  %v4090_v12 = vrot.slane %v4076_v56, %v5244_v35  ;;  %v4091_v21 = vcombine.high %v4083_v53, %v4083_v53  ;;  %v4099_v26 = vrot.slane %v4083_v53, %v5244_v35  ;;  %v4657_v56 = vld [vmem:[%s6427_s11] ss:$0 sm:$0xff] }
 0x38b   :  { %v4350_v7 = vrot.slane %v4343_v41, %v5244_v35 }
 0x38c   :  { %v4477_v63 = vrot.slane %v4476_v10, 2  ;;  %v4092_v58 = vcombine.high %v4090_v12, %v4090_v12  ;;  %v4106_v42 = vrot.slane %v4090_v12, %v5244_v35  ;;  %v4113_v57 = vrot.slane %v4091_v21, %v5244_v35 }
 0x38d   :  { %v4358_v51 = vcombine.low %v4350_v7, %v4357_v16  ;;  %v4121_v31 = vcombine.high %v4099_v26, %v4099_v26 }
 0x38e   :  { %v4478_v49 = vadd.f32 %v4477_v63, %v4476_v10  ;;  %v4120_v39 = vrot.slane %v4092_v58, %v5244_v35  ;;  %v4122_v50 = vcombine.high %v4106_v42, %v4106_v42  ;;  %v4123_v9 = vcombine.high %v4113_v57, %v4113_v57 }
 0x38f   :  { %v4481_v28 = vsel %vm4445_vm4, %v4358_v51, 0.0  ;;  %v4360_v0 = vcombine.low %v4099_v26, %v4113_v57  ;;  %v4381_v19 = vrot.slane %v4121_v31, %v5244_v35 }
 0x390   :  { %v4482_v2 = vrot.slane %v4481_v28, 4  ;;  %v4479_v33 = vrot.slane %v4478_v49, 1  ;;  %v4124_v54 = vcombine.high %v4120_v39, %v4120_v39  ;;  %v4398_v61 = vcombine.low %v4123_v9, %v4106_v42 }
 0x391   :  { %v4399_v8 = vcombine.low %v4120_v39, %v4122_v50  ;;  %v4374_v20 = vrot.slane %v4360_v0, %v5244_v35  ;;  %v4396_v44 = vrot.slane %v4381_v19, %v5244_v35 }
 0x392   :  { %v4483_v52 = vadd.f32 %v4482_v2, %v4481_v28  ;;  %v4480_v15 = vadd.f32 %v4479_v33, %v4478_v49  ;;  %v4406_v60 = vrot.slane %v4398_v61, %v5244_v35  ;;  %v4420_v17 = vrot.slane %v4124_v54, %v5244_v35 }
 0x393   :  { %v4413_v22 = vrot.slane %v4399_v8, %v5244_v35  ;;  %v4382_v25 = vcombine.low %v4367_v59, %v4374_v20 }
 0x394   :  { %v4484_v18 = vrot.slane %v4483_v52, 2  ;;  %v4536_v30 = vsel %vm4535_vm8, %v4480_v15, %v4534_v43  ;;  %v4435_v11 = vrot.slane %v4420_v17, %v5244_v35 }
 0x395   :  { %v4421_v3 = vcombine.low %v4406_v60, %v4413_v22  ;;  %v4389_v13 = vrot.slane %v4382_v25, %v5244_v35 }
 0x396   :  { %v4485_v23 = vadd.f32 %v4484_v18, %v4483_v52 }
 0x397   :  { %v4428_v34 = vrot.slane %v4421_v3, %v5244_v35  ;;  %v4397_v55 = vcombine.low %v4389_v13, %v4396_v44 }
 0x398   :  { %v4486_v37 = vrot.slane %v4485_v23, 1 }
 0x399   :  { %v4436_v24 = vcombine.low %v4428_v34, %v4435_v11  ;;  %v4488_v6 = vsel %vm4445_vm4, %v4397_v55, 0.0 }
 0x39a   :  { %v4487_v45 = vadd.f32 %v4486_v37, %v4485_v23  ;;  %v4489_v47 = vrot.slane %v4488_v6, 4 }
 0x39b   :  { %v4495_v32 = vsel %vm4445_vm4, %v4436_v24, 0.0 }
 0x39c   :  { %v4538_v4 = vsel %vm4537_vm9, %v4487_v45, %v4536_v30  ;;  %v4496_v29 = vrot.slane %v4495_v32, 4  ;;  %v4490_v36 = vadd.f32 %v4489_v47, %v4488_v6 }
 0x39e   :  { %v4497_v5 = vadd.f32 %v4496_v29, %v4495_v32  ;;  %v4491_v38 = vrot.slane %v4490_v36, 2 }
 0x3a0   :  { %v4498_v40 = vrot.slane %v4497_v5, 2  ;;  %v4492_v46 = vadd.f32 %v4491_v38, %v4490_v36 }
 0x3a2   :  { %v4499_v48 = vadd.f32 %v4498_v40, %v4497_v5  ;;  %v4493_v62 = vrot.slane %v4492_v46, 1 }
 0x3a4   :  { %v4500_v35 = vrot.slane %v4499_v48, 1  ;;  %v4494_v1 = vadd.f32 %v4493_v62, %v4492_v46 }
 0x3a6   :  { %v4501_v43 = vadd.f32 %v4500_v35, %v4499_v48  ;;  %v4540_v41 = vsel %vm4539_vm10, %v4494_v1, %v4538_v4 }
 0x3a8   :  { %v4542_v14 = vsel %vm4541_vm11, %v4501_v43, %v4540_v41 }
 0x3a9   :  { %4874 = vmatmul.mubr.msk.f32.vlgmr.msra.gmra.mrb[20].mxu1 %vm1402_vm2, %v4542_v14 }
 0x47c   :  { %v4611_v53 = vpop.f32.mrb[20].mxu1 }
 0x47d   :  { %v4612_v7 = vadd.f32 %v4657_v56, %v4611_v53  ;;  %v4875_v16 = vpop.f32.mrb[21].mxu1 }
 0x47f   :  { %4615 = vst [vmem:[#allocation2] sm:$0xff] %v4612_v7 }
 0x480   :  { %5049 = shalt.err (!%p5046_p4)
}
 0x481   :  { %s5050_s4 = scalar_lea.hbm %s6428_s12, 128 }
 0x482   :  { %p5051_p5 = scmp.ne.s32.totalorder %s6428_s12, %s5050_s4  ;;  %p5054_p6 = scmp.lt.u32.totalorder %s5050_s4, %s6428_s12 }
 0x484   :  { %p5056_p7 = pnand %p5054_p6, %p5051_p5 }
 0x486   :  { %5059 = shalt.err (!%p5056_p7)
}
 0x487   :  { %4625 = dma.vmem_to_hbm [thread:$0]  %s4623_s9, 128, %s6428_s12, [#allocation3]  }
 0x488   :  { %5060 = dma.done.wait [#allocation3], 128  }
 0x489   :  { %5061 = vsyncadd [#allocation3], 4294967168 }
 0x48a   :  { %4629 = vsyncpa [#allocation3], 1 }

</bundles_post_ra>
